<compile_context>
chip_gen: v7x
topology: tpu7x:2x2x1
jax: 0.10.0
libtpu: 0.0.40
codegen_flags: <defaults>
</compile_context>

<pallas_src>
import jax
import jax.numpy as jnp
from jax import lax
from jax.experimental import pallas as pl
from jax.experimental.pallas import tpu as pltpu

_EPS = 1e-5
_LANE = 128
_SUBLANE = 8
_FUSED_M_MAX = 1024      # rows kept whole in-block for the single fused conv+BN kernel


def _vmem_limit_bytes():
    # generation-aware budget: ~48 MiB on v7x (64 MiB/TC), ~96 MiB on v5e/v6e (128 MiB)
    try:
        cap = pltpu.get_tpu_info().vmem_capacity_bytes
    except Exception:
        cap = 64 * 1024 * 1024          # conservative fallback (safe on every generation)
    return int(min(cap * 3 // 4, 100 * 1024 * 1024))


_VMEM_LIMIT = _vmem_limit_bytes()


def _cp(dims=None):
    return pltpu.CompilerParams(dimension_semantics=dims,
                                vmem_limit_bytes=_VMEM_LIMIT)


def _choose_split(size, max_tile, align):
    """Pick (tile, steps) with tile*steps == size, tile <= max_tile, tile % align == 0
    whenever steps > 1 (lane/sublane constraint)."""
    if size <= max_tile:
        return size, 1
    s = 2
    while s <= size:
        if size % s == 0:
            t = size // s
            if t <= max_tile and t % align == 0:
                return t, s
        s += 1
    return size, 1


def _cout_split(cout):
    max_tn = 512
    if cout >= 256:
        max_tn = min(max_tn, cout // 2)   # guarantee >=2 parallel blocks (v7x dual-TC)
    return _choose_split(cout, max_tn, _LANE)


# --------------------- fused conv + BN(+residual)(+ReLU) ---------------------
# small-M path: the whole row axis stays in-block so training-mode BN stats and
# the epilogue run inside the same kernel (one launch per conv).

def _fused_body(a_ref, w_ref, g_ref, b_ref, r_ref, o_ref, relu):
    x = jnp.dot(a_ref[...], w_ref[...], preferred_element_type=jnp.float32)   # (m, tn) f32
    inv_m = 1.0 / x.shape[0]
    mean = jnp.sum(x, axis=0, keepdims=True) * inv_m
    ex2 = jnp.sum(x * x, axis=0, keepdims=True) * inv_m
    var = jnp.maximum(ex2 - mean * mean, 0.0)
    scale = g_ref[...] * lax.rsqrt(var + _EPS)
    shift = b_ref[...] - mean * scale
    y = x * scale + shift                                   # single FMA epilogue
    if r_ref is not None:
        y = y + r_ref[...].astype(jnp.float32)              # residual add
    if relu:
        y = jnp.maximum(y, 0.0)
    o_ref[...] = y.astype(o_ref.dtype)


def _make_fused_kernel(relu, has_residual):
    if has_residual:
        def kernel(a_ref, w_ref, g_ref, b_ref, r_ref, o_ref):
            _fused_body(a_ref, w_ref, g_ref, b_ref, r_ref, o_ref, relu)
    else:
        def kernel(a_ref, w_ref, g_ref, b_ref, o_ref):
            _fused_body(a_ref, w_ref, g_ref, b_ref, None, o_ref, relu)
    return kernel


def _conv_bn_fused(patches, w2d, gamma, beta, *, relu, residual, out_dtype):
    m, kp = patches.shape
    cout = w2d.shape[1]
    tn, nsteps = _cout_split(cout)

    in_specs = [
        # constant block index -> the activation is DMA'd once for the whole grid
        pl.BlockSpec((m, kp), lambda j: (0, 0)),
        pl.BlockSpec((kp, tn), lambda j: (0, j)),
        pl.BlockSpec((1, tn), lambda j: (0, j)),
        pl.BlockSpec((1, tn), lambda j: (0, j)),
    ]
    args = [patches, w2d, gamma, beta]
    if residual is not None:
        in_specs.append(pl.BlockSpec((m, tn), lambda j: (0, j)))
        args.append(residual)

    return pl.pallas_call(
        _make_fused_kernel(relu, residual is not None),
        grid=(nsteps,),
        in_specs=in_specs,
        out_specs=pl.BlockSpec((m, tn), lambda j: (0, j)),
        out_shape=jax.ShapeDtypeStruct((m, cout), out_dtype),
        compiler_params=_cp(("parallel",)),
    )(*args)


# ------------------- M-tiled two-pass conv + BN (large rows) ------------------
# kernel A: matmul + per-(M-tile, Cout-tile) sum / sum-of-squares partials
# kernel B: y = x*scale + shift (+residual) (+relu)

def _mm_stats_kernel(a_ref, w_ref, o_ref, st_ref):
    x = jnp.dot(a_ref[...], w_ref[...], preferred_element_type=jnp.float32)   # (tm, tn)
    o_ref[...] = x
    s = jnp.sum(x, axis=0, keepdims=True)                                      # (1, tn)
    sq = jnp.sum(x * x, axis=0, keepdims=True)
    row = lax.broadcasted_iota(jnp.int32, (8, x.shape[1]), 0)
    st = jnp.where(row == 0, s, jnp.where(row == 1, sq, 0.0))                  # (8, tn)
    st_ref[...] = st[None]


def _norm_body(x_ref, sc_ref, sh_ref, r_ref, o_ref, relu):
    y = x_ref[...] * sc_ref[...] + sh_ref[...]
    if r_ref is not None:
        y = y + r_ref[...].astype(jnp.float32)
    if relu:
        y = jnp.maximum(y, 0.0)
    o_ref[...] = y.astype(o_ref.dtype)


def _make_norm_kernel(relu, has_residual):
    if has_residual:
        def kernel(x_ref, sc_ref, sh_ref, r_ref, o_ref):
            _norm_body(x_ref, sc_ref, sh_ref, r_ref, o_ref, relu)
    else:
        def kernel(x_ref, sc_ref, sh_ref, o_ref):
            _norm_body(x_ref, sc_ref, sh_ref, None, o_ref, relu)
    return kernel


def _conv_bn_tiled(patches, w2d, gamma, beta, *, relu, residual, out_dtype):
    m, kp = patches.shape
    cout = w2d.shape[1]
    tn, nsteps = _cout_split(cout)
    tm, msteps = _choose_split(m, 512, _SUBLANE)

    conv, stats = pl.pallas_call(
        _mm_stats_kernel,
        grid=(msteps, nsteps),
        in_specs=[
            # whole-K activation row band, fetched once per M-tile (index constant in j)
            pl.BlockSpec((tm, kp), lambda i, j: (i, 0)),
            pl.BlockSpec((kp, tn), lambda i, j: (0, j)),
        ],
        out_specs=(
            pl.BlockSpec((tm, tn), lambda i, j: (i, j)),
            pl.BlockSpec((1, 8, tn), lambda i, j: (i, 0, j)),
        ),
        out_shape=(jax.ShapeDtypeStruct((m, cout), jnp.float32),
                   jax.ShapeDtypeStruct((msteps, 8, cout), jnp.float32)),
        compiler_params=_cp(("parallel", "parallel")),
    )(patches, w2d)

    # tiny (1, cout) reductions in JAX glue: fold BN into a single FMA
    mean = jnp.sum(stats[:, 0, :], axis=0, keepdims=True) / m
    ex2 = jnp.sum(stats[:, 1, :], axis=0, keepdims=True) / m
    var = jnp.maximum(ex2 - mean * mean, 0.0)
    scale = gamma * lax.rsqrt(var + _EPS)
    shift = beta - mean * scale

    in_specs = [
        pl.BlockSpec((tm, tn), lambda i, j: (i, j)),
        pl.BlockSpec((1, tn), lambda i, j: (0, j)),
        pl.BlockSpec((1, tn), lambda i, j: (0, j)),
    ]
    args = [conv, scale, shift]
    if residual is not None:
        in_specs.append(pl.BlockSpec((tm, tn), lambda i, j: (i, j)))
        args.append(residual)

    return pl.pallas_call(
        _make_norm_kernel(relu, residual is not None),
        grid=(msteps, nsteps),
        in_specs=in_specs,
        out_specs=pl.BlockSpec((tm, tn), lambda i, j: (i, j)),
        out_shape=jax.ShapeDtypeStruct((m, cout), out_dtype),
        compiler_params=_cp(("parallel", "parallel")),
    )(*args)


# ------------------------------- glue (JAX) ----------------------------------

def _conv_patches(x, kh, kw, stride, padding):
    """NHWC activation -> (N*Ho*Wo, K) patches, K zero-padded to a multiple of 128."""
    n, h, w, cin = x.shape
    if padding:
        x = jnp.pad(x, ((0, 0), (padding, padding), (padding, padding), (0, 0)))
    hp, wp = x.shape[1], x.shape[2]
    ho = (hp - kh) // stride + 1
    wo = (wp - kw) // stride + 1
    if kh == 1 and kw == 1:
        patches = x[:, ::stride, ::stride, :].reshape(n * ho * wo, cin)
        return patches, (n, ho, wo)
    # TODO(synk): replace this im2col materialization with in-kernel tap-indexed
    # reads (manual DMA of shifted/strided windows) to remove the kh*kw HBM
    # inflation of activations on the 3x3 / 7x7 convs.
    cols = []
    for a in range(kh):
        for b in range(kw):
            cols.append(x[:, a:a + ho * stride:stride, b:b + wo * stride:stride, :])
    k = kh * kw * cin
    kp = k if (k <= _LANE or k % _LANE == 0) else ((k + _LANE - 1) // _LANE) * _LANE
    if kp != k:
        # fold the 128-alignment zero pad into the same concat (no extra HBM pass)
        cols.append(jnp.zeros((n, ho, wo, kp - k), x.dtype))
    patches = jnp.concatenate(cols, axis=-1).reshape(n * ho * wo, kp)
    return patches, (n, ho, wo)


def _apply_conv_bn(x, unit, *, stride=1, padding=0, relu=True, residual=None):
    kh, kw, cin, cout = unit['w'].shape
    patches, (n, ho, wo) = _conv_patches(x, kh, kw, stride, padding)
    m, kp = patches.shape
    w2d = unit['w'].reshape(kh * kw * cin, cout)
    if kp != kh * kw * cin:
        w2d = jnp.pad(w2d, ((0, kp - kh * kw * cin), (0, 0)))
    res2d = None if residual is None else residual.reshape(m, cout)
    fn = _conv_bn_fused if m <= _FUSED_M_MAX else _conv_bn_tiled
    out = fn(patches, w2d, unit['g'], unit['b'], relu=relu, residual=res2d,
             out_dtype=jnp.bfloat16)
    return out.reshape(n, ho, wo, cout)


def maxpool2d(x, k=3, stride=2, padding=1):
    """Elementwise max tree in plain JAX (XLA fuses the strided slices; no 9x
    HBM stack, no whole-tensor VMEM block)."""
    n, h, w, c = x.shape
    xp = jnp.pad(x, ((0, 0), (padding, padding), (padding, padding), (0, 0)),
                 constant_values=float('-inf'))
    hp, wp = h + 2 * padding, w + 2 * padding
    ho = (hp - k) // stride + 1
    wo = (wp - k) // stride + 1
    out = None
    for a in range(k):
        for b in range(k):
            sl = xp[:, a:a + ho * stride:stride, b:b + wo * stride:stride, :]
            out = sl if out is None else jnp.maximum(out, sl)
    return out


# ------------------------------ classifier head ------------------------------
# global-avg-pool -> fc(2048->1024-padded) -> relu -> dropout -> fc1(->128-padded)
# -> masked softmax.  All columns beyond 1000 / 10 are zero-weight pads so the
# stored outputs are lane-dense; real outputs are sliced outside.

def _head_kernel(x_ref, fcw_ref, fcb_ref, fc1w_ref, fc1b_ref, mask_ref,
                 o1k_ref, o10_ref):
    pooled = jnp.mean(x_ref[...].astype(jnp.float32), axis=1)            # (N, 2048)
    x1k = (jnp.dot(pooled.astype(jnp.bfloat16), fcw_ref[...],
                   preferred_element_type=jnp.float32) + fcb_ref[...])    # (N, 1024)
    o1k_ref[...] = x1k
    h = jnp.maximum(x1k, 0.0) * mask_ref[...]                             # relu + dropout
    logits = (jnp.dot(h.astype(jnp.bfloat16), fc1w_ref[...],
                      preferred_element_type=jnp.float32) + fc1b_ref[...])  # (N, 128)
    col = lax.broadcasted_iota(jnp.int32, logits.shape, 1)
    logits = jnp.where(col < 10, logits, -jnp.inf)
    mx = jnp.max(logits, axis=1, keepdims=True)
    e = jnp.exp(logits - mx)
    o10_ref[...] = e / jnp.sum(e, axis=1, keepdims=True)


# ------------------------------ parameter init -------------------------------

_RESNET50_CFG = [(64, 3, 1), (128, 4, 2), (256, 6, 2), (512, 3, 2)]


def _winit(key, shape, scale=0.05):
    return (scale * jax.random.normal(key, shape, jnp.float32)).astype(jnp.bfloat16)


def _unit(key, kh, kw, cin, cout):
    return {'w': _winit(key, (kh, kw, cin, cout)),
            'g': jnp.ones((1, cout), jnp.float32),
            'b': jnp.zeros((1, cout), jnp.float32)}


def init_params(key):
    keys = iter(jax.random.split(key, 128))
    nk = lambda: next(keys)
    params = {'stem': _unit(nk(), 7, 7, 3, 64)}
    inplanes, layers = 64, []
    for planes, nblocks, stride in _RESNET50_CFG:
        blocks = []
        for bi in range(nblocks):
            blk = {
                'c1': _unit(nk(), 1, 1, inplanes, planes),
                'c2': _unit(nk(), 3, 3, planes, planes),
                'c3': _unit(nk(), 1, 1, planes, planes * 4),
                'ds': _unit(nk(), 1, 1, inplanes, planes * 4) if bi == 0 else None,
            }
            blocks.append(blk)
            inplanes = planes * 4
        layers.append((blocks, stride))
    params['layers'] = layers
    params['fc_w'] = _winit(nk(), (2048, 1000))
    params['fc_b'] = jnp.zeros((1, 1000), jnp.float32)
    params['fc1_w'] = _winit(nk(), (1000, 10))
    params['fc1_b'] = jnp.zeros((1, 10), jnp.float32)
    return params


# ------------------------------ forward passes -------------------------------

def bottleneck(x, blk, stride):
    # TODO(synk): for the tiny-M layer3/layer4 blocks, fuse conv1(1x1)+conv2(3x3)
    # into one launch (intermediate fits VMEM) to cut fixed launch overhead.
    out = _apply_conv_bn(x, blk['c1'], relu=True)
    out = _apply_conv_bn(out, blk['c2'], stride=stride, padding=1, relu=True)
    if blk['ds'] is not None:
        identity = _apply_conv_bn(x, blk['ds'], stride=stride, relu=False)
    else:
        identity = x
    # conv3 + bn3 + residual add + relu in one fused epilogue
    return _apply_conv_bn(out, blk['c3'], relu=True, residual=identity)


def model_forward(params, x_nchw, add_variable, dropout_key=None):
    # `add_variable` is accepted but unused — exactly as in the reference forward().
    del add_variable
    x = jnp.transpose(x_nchw, (0, 2, 3, 1)).astype(jnp.bfloat16)        # NCHW -> NHWC
    x = _apply_conv_bn(x, params['stem'], stride=2, padding=3, relu=True)
    x = maxpool2d(x, k=3, stride=2, padding=1)
    for blocks, stride in params['layers']:
        for bi, blk in enumerate(blocks):
            x = bottleneck(x, blk, stride if bi == 0 else 1)

    n, h, w, c = x.shape
    feat = x.reshape(n, h * w, c)

    if dropout_key is None:
        dropout_key = jax.random.PRNGKey(0)
    keep = jax.random.bernoulli(dropout_key, 0.5, (n, 1024))
    mask = keep.astype(jnp.float32) * 2.0           # inverted dropout (1/(1-p))

    # lane-dense padded head parameters (zero columns/rows do not change the math)
    fc_w = jnp.pad(params['fc_w'], ((0, 0), (0, 1024 - 1000)))
    fc_b = jnp.pad(params['fc_b'], ((0, 0), (0, 1024 - 1000)))
    fc1_w = jnp.pad(params['fc1_w'], ((0, 1024 - 1000), (0, 128 - 10)))
    fc1_b = jnp.pad(params['fc1_b'], ((0, 0), (0, 128 - 10)))

    x1k, x10p = pl.pallas_call(
        _head_kernel,
        out_shape=(jax.ShapeDtypeStruct((n, 1024), jnp.float32),
                   jax.ShapeDtypeStruct((n, 128), jnp.float32)),
        compiler_params=_cp(),
    )(feat, fc_w, fc_b, fc1_w, fc1_b, mask)

    x1000 = x1k[:, :1000]
    x10 = x10p[:, :10]
    return x10, x1000


if __name__ == "__main__":
    key = jax.random.PRNGKey(0)
    pkey, xkey, akey, dkey = jax.random.split(key, 4)
    params = init_params(pkey)
    x = jax.random.normal(xkey, (2, 3, 64, 64), jnp.float32)     # NCHW like PyTorch
    add_variable = jax.random.normal(akey, (2,), jnp.float32)    # unused, as in reference
    x10, x1000 = model_forward(params, x, add_variable, dropout_key=dkey)
    jax.block_until_ready((x10, x1000))
    assert x10.shape == (2, 10) and x1000.shape == (2, 1000)
    assert bool(jnp.all(jnp.isfinite(x10))) and bool(jnp.all(jnp.isfinite(x1000)))
    print("KERNEL_OK")
</pallas_src>

<mosaic_0001>
module attributes {stable_mosaic.version = 11 : i64} {
  func.func @_mm_stats_kernel(%arg0: i32, %arg1: i32, %arg2: memref<512x256xbf16, #tpu.memory_space<vmem>>, %arg3: memref<256x64xbf16, #tpu.memory_space<vmem>>, %arg4: memref<512x64xf32, #tpu.memory_space<vmem>>, %arg5: memref<1x8x64xf32, #tpu.memory_space<vmem>>) attributes {dimension_semantics = [#tpu.dimension_semantics<parallel>, #tpu.dimension_semantics<parallel>], iteration_bounds = array<i64: 4, 1>, scalar_prefetch = 0 : i64, scratch_operands = 0 : i64, tpu.core_type = #tpu.core_type<tc>, window_params = [{transform_indices = @transform_0, window_bounds = array<i64: 512, 256>}, {transform_indices = @transform_1, window_bounds = array<i64: 256, 64>}, {transform_indices = @transform_2, window_bounds = array<i64: 512, 64>}, {transform_indices = @transform_3, window_bounds = array<i64: 1, 8, 64>}]} {
    %c0 = arith.constant 0 : index
    %c0_0 = arith.constant 0 : index
    %0 = vector.load %arg2[%c0, %c0_0] : memref<512x256xbf16, #tpu.memory_space<vmem>>, vector<512x256xbf16>
    %c0_1 = arith.constant 0 : index
    %c0_2 = arith.constant 0 : index
    %1 = vector.load %arg3[%c0_1, %c0_2] : memref<256x64xbf16, #tpu.memory_space<vmem>>, vector<256x64xbf16>
    %cst = arith.constant dense<0.000000e+00> : vector<512x64xf32>
    %2 = tpu.matmul %0, %1, %cst {dimension_numbers = #tpu.dot_dimension_numbers<[1], [0], [0], [1], [0, 0, 1, 1], [], []>} : vector<512x256xbf16>, vector<256x64xbf16>, vector<512x64xf32> -> vector<512x64xf32>
    %c0_3 = arith.constant 0 : index
    %c0_4 = arith.constant 0 : index
    %3 = vector.load %arg4[%c0_3, %c0_4] : memref<512x64xf32, #tpu.memory_space<vmem>>, vector<512x64xf32>
    tpu.vector_store %arg4[%c0_3, %c0_4], %2 {strides = array<i32>} : memref<512x64xf32, #tpu.memory_space<vmem>>, vector<512x64xf32>,
    %cst_5 = arith.constant dense<0.000000e+00> : vector<64xf32>
    %4 = vector.multi_reduction <add>, %2, %cst_5 [0] : vector<512x64xf32> to vector<64xf32>
    %5 = vector.shape_cast %4 : vector<64xf32> to vector<1x64xf32>
    %6 = arith.mulf %2, %2 : vector<512x64xf32>
    %cst_6 = arith.constant dense<0.000000e+00> : vector<64xf32>
    %7 = vector.multi_reduction <add>, %6, %cst_6 [0] : vector<512x64xf32> to vector<64xf32>
    %8 = vector.shape_cast %7 : vector<64xf32> to vector<1x64xf32>
    %9 = tpu.iota {dimensions = array<i32: 0>} : vector<8x64xi32>
    %c0_i32 = arith.constant 0 : i32
    %10 = vector.broadcast %c0_i32 : i32 to vector<8x64xi32>
    %11 = arith.cmpi eq, %9, %10 : vector<8x64xi32>
    %c1_i32 = arith.constant 1 : i32
    %12 = vector.broadcast %c1_i32 : i32 to vector<8x64xi32>
    %13 = arith.cmpi eq, %9, %12 : vector<8x64xi32>
    %cst_7 = arith.constant 0.000000e+00 : f32
    %14 = vector.shape_cast %8 : vector<1x64xf32> to vector<1x64xf32>
    %15 = vector.broadcast %14 : vector<1x64xf32> to vector<8x64xf32>
    %16 = vector.broadcast %cst_7 : f32 to vector<8x64xf32>
    %17 = arith.select %13, %15, %16 : vector<8x64xi1>, vector<8x64xf32>
    %18 = vector.shape_cast %5 : vector<1x64xf32> to vector<1x64xf32>
    %19 = vector.broadcast %18 : vector<1x64xf32> to vector<8x64xf32>
    %20 = arith.select %11, %19, %17 : vector<8x64xi1>, vector<8x64xf32>
    %21 = vector.shape_cast %20 : vector<8x64xf32> to vector<1x8x64xf32>
    %c0_8 = arith.constant 0 : index
    %c0_9 = arith.constant 0 : index
    %c0_10 = arith.constant 0 : index
    %22 = vector.load %arg5[%c0_8, %c0_9, %c0_10] : memref<1x8x64xf32, #tpu.memory_space<vmem>>, vector<1x8x64xf32>
    tpu.vector_store %arg5[%c0_8, %c0_9, %c0_10], %21 {strides = array<i32>} : memref<1x8x64xf32, #tpu.memory_space<vmem>>, vector<1x8x64xf32>,
    return
  }
  func.func @transform_0(%arg0: i32, %arg1: i32) -> (i32, i32) {
    %c0_i32 = arith.constant 0 : i32
    %c0_i32_0 = arith.constant 0 : i32
    return %arg0, %c0_i32 : i32, i32
  }
  func.func @transform_1(%arg0: i32, %arg1: i32) -> (i32, i32) {
    %c0_i32 = arith.constant 0 : i32
    %c0_i32_0 = arith.constant 0 : i32
    return %c0_i32, %arg1 : i32, i32
  }
  func.func @transform_2(%arg0: i32, %arg1: i32) -> (i32, i32) {
    %c0_i32 = arith.constant 0 : i32
    return %arg0, %arg1 : i32, i32
  }
  func.func @transform_3(%arg0: i32, %arg1: i32) -> (i32, i32, i32) {
    %c0_i32 = arith.constant 0 : i32
    %c0_i32_0 = arith.constant 0 : i32
    return %arg0, %c0_i32, %arg1 : i32, i32, i32
  }
}

</mosaic_0001>

<bundles_post_ra>
// kernel: tpu_custom_call.1
= control target key start
LH: loop header
LB: loop body
LE: loop exit
PB: predicated region body
PF: predicated region fallthrough
CT: control target
= control target key end

     0   :  { %9 = vsyncpa [#allocation3], 0  ;;  %s2822_s0 = inlined_call_operand.hbm [shape: bf16[2048,256], index: 0, kind: input, shape index: {}]   ;;  %s2823_s1 = inlined_call_operand.vmem [shape: bf16[256,64], index: 1, kind: input, shape index: {}]   ;;  %s2824_s2 = inlined_call_operand.vmem [shape: f32[2048,64], index: 2, kind: output, shape index: {0}]   ;;  %s2825_s3 = inlined_call_operand.hbm [shape: f32[4,8,64], index: 3, kind: output, shape index: {1}]  }
   0x1   :  { %11 = vsyncpa [#allocation3 + $0x1], 0 }
   0x2   :  { %12 = vsyncpa [#allocation4], 0 }
   0x3   :  { %14 = vsyncpa [#allocation4 + $0x1], 0  ;;  %s2049_s12 = smov 0   ;;  %s2051_s13 = smov 0  }
   0x4   :  { %s2053_s14 = smov 0   ;;  %s2055_s15 = smov 0  }
   0x5   :  { %s2057_s16 = smov 0   ;;  %s2059_s17 = smov 0  }
   0x6 LB: > { %s1601_s18 = sadd.s32 4294967295, %s2022_s17   ;;  %s1602_s19 = sadd.s32 4294967294, %s2022_s17   ;;  %s2022_s17 = sphi %s2059_s17, %s20_s17   ;;  %s2018_s16 = sphi %s2057_s16, %s2839_s16   ;;  %s2014_s15 = sphi %s2055_s15, %s2838_s15   ;;  %s2010_s14 = sphi %s2053_s14, %s2837_s14   ;;  %s2006_s13 = sphi %s2051_s13, %s2836_s13   ;;  %s2002_s12 = sphi %s2049_s12, %s2835_s12  }
   0x7   : > { %s32_s20 = sadd.s32 1, %s2018_s16  ;;  %s39_s21 = sadd.s32 1, %s2010_s14 }
   0x8   : > { %p34_p0 = scmp.ge.s32.totalorder %s32_s20, 4  ;;  %p46_p1 = scmp.ne.s32.totalorder %s2010_s14, %s2006_s13 }
   0x9   : > { %p47_p2 = scmp.eq.s32.totalorder %s2022_s17, 0  ;;  %p52_p3 = scmp.ne.s32.totalorder %s2006_s13, %s2002_s12 }
   0xa   : > { %s2841_s20 = smov (%p34_p0, %s32_s20), 0  ;;  %p53_p5 = scmp.eq.s32.totalorder %s1601_s18, 0 }
   0xb   : > { %p2090_p4 = por %p47_p2, %p46_p1  ;;  %s36_s23 = ssub.s32 %s2018_s16, %s2841_s20 }
   0xc   : > { %p132_p6 = scmp.eq.s32.totalorder %s1601_s18, 3  ;;  %p37_p7 = scmp.eq.s32.totalorder %s36_s23, 0 }
   0xd   : > { %p2096_p8 = por %p53_p5, %p52_p3  ;;  %p138_p10 = scmp.eq.s32.totalorder %s1602_s19, 3 }
   0xe   : > { %p2100_p9 = por %p132_p6, %p46_p1  ;;  %p1745_p12 = scmp.lt.s32.totalorder %s2022_s17, 4 }
   0xf   : > { %s2105_s26 = scalar_select %p37_p7, %s2010_s14, %s39_s21  }
  0x10   : > { %s2829_s25 = scalar_select %p2100_p9, 1, 0 }
  0x11   : > { %p2107_p11 = por %p138_p10, %p52_p3  ;;  %s165_s28 = sand.u32 1, %s2010_s14  }
  0x12   : > { %s1606_s29 = sshll.u32 %s165_s28, 9  ;;  %s1700_s30 = sshll.u32 %s2018_s16, 13 }
  0x13   : > { %s2830_s27 = scalar_select %p2107_p11, 1, 0 }
  0x14   : > { %s2117_s6 = scalar_lea.hbm %s2822_s0, %s1700_s30  ;;  %s169_s7 = scalar_lea.vmem [#allocation2], %s1606_s29 }
  0x15   : > { %s177_s8 = sshll.u32 %s169_s7, 4  ;;  %p2123_p13 = pnand %p1745_p12, %p2090_p4  ;;  %s2119_s8 = int_to_ptr.vmem [resolvable:$true] %s177_s8 }
  0x16   : > { %s2128_s10 = scalar_lea.sflag [#allocation3], %s165_s28  ;;  %s1910_s11 = scalar_lea.hbm %s2117_s6, 8192 }
  0x17   : > { %p1911_p1 = scmp.ne.s32.totalorder %s2117_s6, %s1910_s11  ;;  %p1912_p2 = pneg %p2123_p13 }
  0x18   : > { %s1915_s21 = scalar_lea.hbm %s2822_s0, 32768  ;;  %p1916_p4 = scmp.lt.u32.totalorder %s2117_s6, %s2822_s0 }
  0x19   : > { %p1913_p3 = pnand %p1912_p2, %p1911_p1  ;;  %p1917_p6 = scmp.lt.u32.totalorder %s1915_s21, %s1910_s11 }
  0x1a   : > { %p1919_p10 = scmp.lt.u32.totalorder %s1910_s11, %s2117_s6 }
  0x1b   : > { %p1914_p5 = pneg %p1913_p3  ;;  %p1918_p7 = por %p1917_p6, %p1916_p4 }
  0x1d   : > { %p1920_p12 = por %p1919_p10, %p1918_p7 }
  0x1f   : > { %p1921_p0 = pnand %p1920_p12, %p1914_p5 }
  0x21   : > { %1924 = shalt.err (!%p1921_p0)
}
  0x22   : > { %s1925_s28 = scalar_lea.vmem %s2119_s8, 8192  ;;  %s2024_s29 = smov [#allocation2]  }
  0x23   : > { %p1926_p1 = scmp.ne.s32.totalorder %s2119_s8, %s1925_s28  ;;  %s1930_s30 = sshll.u32 %s2024_s29, 4  ;;  %s1931_s30 = int_to_ptr.vmem [resolvable:$false] %s1930_s30 }
  0x24   : > { %s1932_s4 = scalar_lea.vmem %s1931_s30, 16384  ;;  %p1933_p9 = scmp.lt.s32.totalorder %s2119_s8, %s1931_s30 }
  0x25   : > { %p1928_p3 = pnand %p1926_p1, %p1912_p2  ;;  %p1934_p4 = scmp.lt.s32.totalorder %s1932_s4, %s1925_s28 }
  0x27   : > { %p1929_p11 = pneg %p1928_p3  ;;  %p1935_p6 = por %p1934_p4, %p1933_p9 }
  0x29   : > { %p1936_p7 = pnand %p1935_p6, %p1929_p11 }
  0x2b   : > { %1939 = shalt.err (!%p1936_p7)
}
  0x2c   : > { %s2025_s5 = smov 128   ;;  %s2026_s7 = smov 8  }
  0x2d   : > { %1740 = dma.hbm_to_vmem [thread:$0]  (!%p2123_p13), %s2117_s6, 8192, %s2119_s8, %s2128_s10, %s2025_s5, %s2025_s5, %s2026_s7  }
  0x2e   : > { %p185_p0 = scmp.lt.s32.totalorder %s2022_s17, 5  ;;  %p2832_p2 = scmp.ge.s32.totalorder %s2022_s17, 1 }
  0x30   : > { %p186_p5 = pnand %p2832_p2, %p185_p0 }
  0x31   : > { %s2160_s11 = sand.u32 (!%p186_p5), 1, %s2006_s13  }
  0x32   : > { %189 = sbr.rel (%p186_p5) target bundleno = 554 (0x22a), region = 28  ;;  %s1611_s18 = sshll.u32 (!%p186_p5), %s2160_s11, 9 }
  0x33   : > { %s192_s19 = scalar_lea.sflag (!%p186_p5), [#allocation3], %s2160_s11  ;;  %s2164_s21 = scalar_lea.vmem (!%p186_p5), [#allocation2], %s1611_s18 }
  0x39   : > { %1993 = dma.done.wait (%p2096_p8), %s192_s19, 8192  }
  0x3a   : > { %1995 = vsyncadd (%p2096_p8), %s192_s19, 4294959104  ;;  %v2027_v0 = vmov 0   ;;  %v1798_v1 = vld [vmem:[%s2823_s1] sm:$0xff]   ;;  %v1799_v2 = vld [vmem:[%s2823_s1 + $0x8] sm:$0xff]   ;;  %s1613_s9 = sshll.u32 %s2014_s15, 6  ;;  %vm1046_vm0 = vcmask 523264  }
  0x3b   : > { %757 = vmatprep.subr.bf16.mxu0 %v2027_v0  ;;  %1701 = vmatprep.subr.bf16.mxu1 %v2027_v0  ;;  %v1800_v3 = vld [vmem:[%s2823_s1 + $0x10] sm:$0xff]   ;;  %v1801_v4 = vld [vmem:[%s2823_s1 + $0x18] sm:$0xff]   ;;  %v1802_v5 = vld [vmem:[%s2823_s1 + $0x20] sm:$0xff]   ;;  %p236_p8 = scmp.lt.s32.totalorder %s1613_s9, 255  ;;  %s1696_s28 = sshll.u32 %s2014_s15, 7 }
  0x3c   : > { %758 = vmatpush1.bf16.msra.mxu0 %v1798_v1  ;;  %1717 = vmatpush1.bf16.msra.mxu1 %v1798_v1  ;;  %v1816_v6 = vld [vmem:[%s2164_s21 + $0x4] ss:$8 sps:$4 sm:$0xff]   ;;  %v1804_v8 = vld [vmem:[%s2823_s1 + $0x30] sm:$0xff]   ;;  %v1805_v9 = vld [vmem:[%s2823_s1 + $0x38] sm:$0xff]   ;;  %s2773_s7 = scalar_lea.hbm %s2825_s3, %s1696_s28  ;;  %s1457_s15 = scalar_lea.sflag [#allocation4], %s2160_s11 }
  0x3d   : > { %759 = vmatprep.subr.bf16.mxu0 %v2027_v0  ;;  %1702 = vmatprep.subr.bf16.mxu1 %v2027_v0  ;;  %v1803_v7 = vld [vmem:[%s2823_s1 + $0x28] sm:$0xff]   ;;  %v1806_v11 = vld [vmem:[%s2823_s1 + $0x40] sm:$0xff]   ;;  %v1808_v13 = vld [vmem:[%s2823_s1 + $0x50] sm:$0xff]   ;;  %s2843_s9 = smov (!%p236_p8, %s1613_s9), 255  ;;  %p2833_p11 = scmp.ne.s32.totalorder %s2829_s25, 0 }
  0x3e   : > { %789 = vmatprep.mubr.bf16.mxu0 %v1816_v6  ;;  %v1840_v10 = vld [vmem:[%s2164_s21 + $0x104] ss:$8 sps:$4 sm:$0xff]   ;;  %v1809_v14 = vld [vmem:[%s2823_s1 + $0x58] sm:$0xff]   ;;  %v1812_v17 = vld [vmem:[%s2823_s1 + $0x70] sm:$0xff]   ;;  %s1614_s10 = sshll.u32 %s2843_s9, 3  ;;  %s2028_s19 = smov [#allocation5]  }
  0x3f   : > { %917 = vmatprep.mubr.bf16.mxu1 %v1840_v10  ;;  %v1807_v12 = vld [vmem:[%s2823_s1 + $0x48] sm:$0xff]   ;;  %v1810_v15 = vld [vmem:[%s2823_s1 + $0x60] sm:$0xff]   ;;  %v1813_v18 = vld [vmem:[%s2823_s1 + $0x78] sm:$0xff]   ;;  %s2318_s23 = scalar_lea.vmem %s2824_s2, %s1614_s10  ;;  %s1944_s6 = sshll.u32 %s2028_s19, 4  ;;  %s1945_s6 = int_to_ptr.vmem [resolvable:$false] %s1944_s6 }
  0x40   : > { %760 = vmatpush1.bf16.msra.mxu0 %v1799_v2  ;;  %1718 = vmatpush1.bf16.msra.mxu1 %v1799_v2  ;;  %v1811_v16 = vld [vmem:[%s2823_s1 + $0x68] sm:$0xff]   ;;  %v1817_v21 = vld [vmem:[%s2164_s21 + $0x14] ss:$8 sps:$4 sm:$0xff]   ;;  %v1819_v23 = vld [vmem:[%s2164_s21 + $0x10] ss:$8 sps:$4 sm:$0xff]   ;;  %s1946_s8 = scalar_lea.vmem %s1945_s6, 256 }
  0x41   : > { %761 = vmatprep.subr.bf16.mxu0 %v2027_v0  ;;  %1703 = vmatprep.subr.bf16.mxu1 %v2027_v0  ;;  %v1814_v19 = vld [vmem:[%s2164_s21] ss:$8 sps:$4 sm:$0xff]   ;;  %v1844_v22 = vld [vmem:[%s2164_s21 + $0x114] ss:$8 sps:$4 sm:$0xff]   ;;  %v1846_v24 = vld [vmem:[%s2164_s21 + $0x110] ss:$8 sps:$4 sm:$0xff]  }
  0x42   : > { %v1838_v20 = vld [vmem:[%s2164_s21 + $0x100] ss:$8 sps:$4 sm:$0xff]   ;;  %v1820_v25 = vld [vmem:[%s2164_s21 + $0x24] ss:$8 sps:$4 sm:$0xff]   ;;  %v1823_v29 = vld [vmem:[%s2164_s21 + $0x34] ss:$8 sps:$4 sm:$0xff]  }
  0x43   : > { %v1850_v26 = vld [vmem:[%s2164_s21 + $0x124] ss:$8 sps:$4 sm:$0xff]   ;;  %v1822_v27 = vld [vmem:[%s2164_s21 + $0x20] ss:$8 sps:$4 sm:$0xff]   ;;  %v1856_v30 = vld [vmem:[%s2164_s21 + $0x134] ss:$8 sps:$4 sm:$0xff]  }
  0x44   : > { %762 = vmatpush1.bf16.msra.mxu0 %v1800_v3  ;;  %1719 = vmatpush1.bf16.msra.mxu1 %v1800_v3  ;;  %v1852_v28 = vld [vmem:[%s2164_s21 + $0x120] ss:$8 sps:$4 sm:$0xff]   ;;  %v1825_v31 = vld [vmem:[%s2164_s21 + $0x30] ss:$8 sps:$4 sm:$0xff]   ;;  %v1826_v33 = vld [vmem:[%s2164_s21 + $0x44] ss:$8 sps:$4 sm:$0xff]  }
  0x45   : > { %763 = vmatprep.subr.bf16.mxu0 %v2027_v0  ;;  %1704 = vmatprep.subr.bf16.mxu1 %v2027_v0  ;;  %v1858_v32 = vld [vmem:[%s2164_s21 + $0x130] ss:$8 sps:$4 sm:$0xff]   ;;  %v1862_v34 = vld [vmem:[%s2164_s21 + $0x144] ss:$8 sps:$4 sm:$0xff]   ;;  %v1828_v35 = vld [vmem:[%s2164_s21 + $0x40] ss:$8 sps:$4 sm:$0xff]  }
  0x46   : > { %v1864_v36 = vld [vmem:[%s2164_s21 + $0x140] ss:$8 sps:$4 sm:$0xff]   ;;  %v1829_v37 = vld [vmem:[%s2164_s21 + $0x54] ss:$8 sps:$4 sm:$0xff]   ;;  %v1831_v39 = vld [vmem:[%s2164_s21 + $0x50] ss:$8 sps:$4 sm:$0xff]  }
  0x47   : > { %v1868_v38 = vld [vmem:[%s2164_s21 + $0x154] ss:$8 sps:$4 sm:$0xff]   ;;  %v1870_v40 = vld [vmem:[%s2164_s21 + $0x150] ss:$8 sps:$4 sm:$0xff]   ;;  %v1832_v41 = vld [vmem:[%s2164_s21 + $0x64] ss:$8 sps:$4 sm:$0xff]  }
  0x48   : > { %764 = vmatpush1.bf16.msra.mxu0 %v1801_v4  ;;  %1720 = vmatpush1.bf16.msra.mxu1 %v1801_v4  ;;  %v1874_v42 = vld [vmem:[%s2164_s21 + $0x164] ss:$8 sps:$4 sm:$0xff]   ;;  %v1834_v43 = vld [vmem:[%s2164_s21 + $0x60] ss:$8 sps:$4 sm:$0xff]   ;;  %v1835_v45 = vld [vmem:[%s2164_s21 + $0x74] ss:$8 sps:$4 sm:$0xff]  }
  0x49   : > { %765 = vmatprep.subr.bf16.mxu0 %v2027_v0  ;;  %1705 = vmatprep.subr.bf16.mxu1 %v2027_v0  ;;  %v1876_v44 = vld [vmem:[%s2164_s21 + $0x160] ss:$8 sps:$4 sm:$0xff]   ;;  %v1880_v46 = vld [vmem:[%s2164_s21 + $0x174] ss:$8 sps:$4 sm:$0xff]   ;;  %v1837_v47 = vld [vmem:[%s2164_s21 + $0x70] ss:$8 sps:$4 sm:$0xff]  }
  0x4a   : > { %v1882_v48 = vld [vmem:[%s2164_s21 + $0x170] ss:$8 sps:$4 sm:$0xff]   ;;  %v1841_v49 = vld [vmem:[%s2164_s21 + $0x84] ss:$8 sps:$4 sm:$0xff]   ;;  %v1843_v51 = vld [vmem:[%s2164_s21 + $0x80] ss:$8 sps:$4 sm:$0xff]  }
  0x4b   : > { %v1886_v50 = vld [vmem:[%s2164_s21 + $0x184] ss:$8 sps:$4 sm:$0xff]   ;;  %v1888_v52 = vld [vmem:[%s2164_s21 + $0x180] ss:$8 sps:$4 sm:$0xff]   ;;  %v1847_v53 = vld [vmem:[%s2164_s21 + $0x94] ss:$8 sps:$4 sm:$0xff]  }
  0x4c   : > { %766 = vmatpush1.bf16.msra.mxu0 %v1802_v5  ;;  %1721 = vmatpush1.bf16.msra.mxu1 %v1802_v5  ;;  %v1889_v54 = vld [vmem:[%s2164_s21 + $0x194] ss:$8 sps:$4 sm:$0xff]   ;;  %v1849_v55 = vld [vmem:[%s2164_s21 + $0x90] ss:$8 sps:$4 sm:$0xff]   ;;  %v1853_v57 = vld [vmem:[%s2164_s21 + $0xa4] ss:$8 sps:$4 sm:$0xff]  }
  0x4d   : > { %767 = vmatprep.subr.bf16.mxu0 %v2027_v0  ;;  %1706 = vmatprep.subr.bf16.mxu1 %v2027_v0  ;;  %v1891_v56 = vld [vmem:[%s2164_s21 + $0x190] ss:$8 sps:$4 sm:$0xff]   ;;  %v1892_v58 = vld [vmem:[%s2164_s21 + $0x1a4] ss:$8 sps:$4 sm:$0xff]   ;;  %v1855_v59 = vld [vmem:[%s2164_s21 + $0xa0] ss:$8 sps:$4 sm:$0xff]  }
  0x4e   : > { %v1894_v60 = vld [vmem:[%s2164_s21 + $0x1a0] ss:$8 sps:$4 sm:$0xff]   ;;  %v1859_v61 = vld [vmem:[%s2164_s21 + $0xb4] ss:$8 sps:$4 sm:$0xff]   ;;  %v1861_v63 = vld [vmem:[%s2164_s21 + $0xb0] ss:$8 sps:$4 sm:$0xff]  }
  0x4f   : > { %v1895_v62 = vld [vmem:[%s2164_s21 + $0x1b4] ss:$8 sps:$4 sm:$0xff]   ;;  %v1865_v1 = vld [vmem:[%s2164_s21 + $0xc4] ss:$8 sps:$4 sm:$0xff]   ;;  %v1867_v3 = vld [vmem:[%s2164_s21 + $0xc0] ss:$8 sps:$4 sm:$0xff]  }
  0x50   : > { %768 = vmatpush1.bf16.msra.mxu0 %v1803_v7  ;;  %1722 = vmatpush1.bf16.msra.mxu1 %v1803_v7  ;;  %v1898_v2 = vld [vmem:[%s2164_s21 + $0x1c4] ss:$8 sps:$4 sm:$0xff]   ;;  %v1900_v4 = vld [vmem:[%s2164_s21 + $0x1c0] ss:$8 sps:$4 sm:$0xff]   ;;  %v1871_v5 = vld [vmem:[%s2164_s21 + $0xd4] ss:$8 sps:$4 sm:$0xff]  }
  0x51   : > { %769 = vmatprep.subr.bf16.mxu0 %v2027_v0  ;;  %1707 = vmatprep.subr.bf16.mxu1 %v2027_v0  ;;  %v1901_v6 = vld [vmem:[%s2164_s21 + $0x1d4] ss:$8 sps:$4 sm:$0xff]   ;;  %v1873_v7 = vld [vmem:[%s2164_s21 + $0xd0] ss:$8 sps:$4 sm:$0xff]   ;;  %v1904_v10 = vld [vmem:[%s2164_s21 + $0x1e4] ss:$8 sps:$4 sm:$0xff]  }
  0x54   : > { %770 = vmatpush1.bf16.msra.mxu0 %v1804_v8  ;;  %1723 = vmatpush1.bf16.msra.mxu1 %v1804_v8  ;;  %v1903_v8 = vld [vmem:[%s2164_s21 + $0x1d0] ss:$8 sps:$4 sm:$0xff]  }
  0x55   : > { %771 = vmatprep.subr.bf16.mxu0 %v2027_v0  ;;  %1708 = vmatprep.subr.bf16.mxu1 %v2027_v0 }
  0x58   : > { %772 = vmatpush1.bf16.msra.mxu0 %v1805_v9  ;;  %1724 = vmatpush1.bf16.msra.mxu1 %v1805_v9  ;;  %v1877_v9 = vld [vmem:[%s2164_s21 + $0xe4] ss:$8 sps:$4 sm:$0xff]  }
  0x59   : > { %773 = vmatprep.subr.bf16.mxu0 %v2027_v0  ;;  %1709 = vmatprep.subr.bf16.mxu1 %v2027_v0 }
  0x5c   : > { %774 = vmatpush1.bf16.msra.mxu0 %v1806_v11  ;;  %1725 = vmatpush1.bf16.msra.mxu1 %v1806_v11  ;;  %v1879_v11 = vld [vmem:[%s2164_s21 + $0xe0] ss:$8 sps:$4 sm:$0xff]  }
  0x5d   : > { %775 = vmatprep.subr.bf16.mxu0 %v2027_v0  ;;  %1710 = vmatprep.subr.bf16.mxu1 %v2027_v0 }
  0x60   : > { %776 = vmatpush1.bf16.msra.mxu0 %v1807_v12  ;;  %1726 = vmatpush1.bf16.msra.mxu1 %v1807_v12  ;;  %v1906_v12 = vld [vmem:[%s2164_s21 + $0x1e0] ss:$8 sps:$4 sm:$0xff]  }
  0x61   : > { %777 = vmatprep.subr.bf16.mxu0 %v2027_v0  ;;  %1711 = vmatprep.subr.bf16.mxu1 %v2027_v0 }
  0x64   : > { %778 = vmatpush1.bf16.msra.mxu0 %v1808_v13  ;;  %1727 = vmatpush1.bf16.msra.mxu1 %v1808_v13  ;;  %v1883_v13 = vld [vmem:[%s2164_s21 + $0xf4] ss:$8 sps:$4 sm:$0xff]  }
  0x65   : > { %779 = vmatprep.subr.bf16.mxu0 %v2027_v0  ;;  %1712 = vmatprep.subr.bf16.mxu1 %v2027_v0 }
  0x68   : > { %780 = vmatpush1.bf16.msra.mxu0 %v1809_v14  ;;  %1728 = vmatpush1.bf16.msra.mxu1 %v1809_v14  ;;  %v1907_v14 = vld [vmem:[%s2164_s21 + $0x1f4] ss:$8 sps:$4 sm:$0xff]  }
  0x69   : > { %781 = vmatprep.subr.bf16.mxu0 %v2027_v0  ;;  %1713 = vmatprep.subr.bf16.mxu1 %v2027_v0 }
  0x6c   : > { %782 = vmatpush1.bf16.msra.mxu0 %v1810_v15  ;;  %1729 = vmatpush1.bf16.msra.mxu1 %v1810_v15  ;;  %v1885_v15 = vld [vmem:[%s2164_s21 + $0xf0] ss:$8 sps:$4 sm:$0xff]  }
  0x6d   : > { %783 = vmatprep.subr.bf16.mxu0 %v2027_v0  ;;  %1714 = vmatprep.subr.bf16.mxu1 %v2027_v0 }
  0x70   : > { %784 = vmatpush1.bf16.msra.mxu0 %v1811_v16  ;;  %1730 = vmatpush1.bf16.msra.mxu1 %v1811_v16  ;;  %v1909_v16 = vld [vmem:[%s2164_s21 + $0x1f0] ss:$8 sps:$4 sm:$0xff]  }
  0x71   : > { %785 = vmatprep.subr.bf16.mxu0 %v2027_v0  ;;  %1715 = vmatprep.subr.bf16.mxu1 %v2027_v0 }
  0x74   : > { %786 = vmatpush1.bf16.msra.mxu0 %v1812_v17  ;;  %1731 = vmatpush1.bf16.msra.mxu1 %v1812_v17 }
  0x75   : > { %787 = vmatprep.subr.bf16.mxu0 %v2027_v0  ;;  %1716 = vmatprep.subr.bf16.mxu1 %v2027_v0  ;;  %v1897_v0 = vld [vmem:[%s2164_s21 + $0x1b0] ss:$8 sps:$4 sm:$0xff]   ;;  %s1612_s21 = sshll.u32 %s2160_s11, 3 }
  0x76   : > { %s229_s29 = scalar_lea.vmem [#allocation5], %s1612_s21 }
  0x77   : > { %s1475_s30 = sshll.u32 %s229_s29, 4  ;;  %s2775_s30 = int_to_ptr.vmem [resolvable:$true] %s1475_s30 }
  0x78   : > { %788 = vmatpush1.bf16.msra.mxu0 %v1813_v18  ;;  %1732 = vmatpush1.bf16.msra.mxu1 %v1813_v18  ;;  %s1940_s18 = scalar_lea.vmem %s2775_s30, 128  ;;  %p1947_p12 = scmp.lt.s32.totalorder %s2775_s30, %s1945_s6 }
  0x79   : > { %p1941_p9 = scmp.ne.s32.totalorder %s2775_s30, %s1940_s18  ;;  %p1948_p1 = scmp.lt.s32.totalorder %s1946_s8, %s1940_s18 }
  0x7b   : > { %790 = vmatmul.mubr.bf16.vlgmr.msra.gmra.mrb[0].mxu0 %v1814_v19  ;;  %918 = vmatmul.mubr.bf16.vlgmr.msra.gmra.mrb[0].mxu1 %v1838_v20  ;;  %p1942_p13 = pnand %p1941_p9, %p2833_p11  ;;  %p1949_p3 = por %p1948_p1, %p1947_p12 }
  0x7c   : > { %797 = vmatprep.mubr.bf16.mxu0 %v1817_v21  ;;  %925 = vmatprep.mubr.bf16.mxu1 %v1844_v22 }
  0x7d   : > { %p1943_p10 = pneg %p1942_p13 }
  0x7f   : > { %p1950_p4 = pnand %p1949_p3, %p1943_p10 }
  0x83   : > { %798 = vmatmul.mubr.bf16.gmra.mrb[4].mxu0 %v1819_v23  ;;  %926 = vmatmul.mubr.bf16.gmra.mrb[4].mxu1 %v1846_v24 }
  0x84   : > { %805 = vmatprep.mubr.bf16.mxu0 %v1820_v25  ;;  %933 = vmatprep.mubr.bf16.mxu1 %v1850_v26 }
  0x8b   : > { %806 = vmatmul.mubr.bf16.gmra.mrb[8].mxu0 %v1822_v27  ;;  %934 = vmatmul.mubr.bf16.gmra.mrb[8].mxu1 %v1852_v28 }
  0x8c   : > { %813 = vmatprep.mubr.bf16.mxu0 %v1823_v29  ;;  %941 = vmatprep.mubr.bf16.mxu1 %v1856_v30 }
  0x93   : > { %814 = vmatmul.mubr.bf16.gmra.mrb[12].mxu0 %v1825_v31  ;;  %942 = vmatmul.mubr.bf16.gmra.mrb[12].mxu1 %v1858_v32 }
  0x94   : > { %821 = vmatprep.mubr.bf16.mxu0 %v1826_v33  ;;  %949 = vmatprep.mubr.bf16.mxu1 %v1862_v34 }
  0x9b   : > { %822 = vmatmul.mubr.bf16.gmra.mrb[16].mxu0 %v1828_v35  ;;  %950 = vmatmul.mubr.bf16.gmra.mrb[16].mxu1 %v1864_v36 }
  0x9c   : > { %829 = vmatprep.mubr.bf16.mxu0 %v1829_v37  ;;  %957 = vmatprep.mubr.bf16.mxu1 %v1868_v38 }
  0xa3   : > { %830 = vmatmul.mubr.bf16.gmra.mrb[20].mxu0 %v1831_v39  ;;  %958 = vmatmul.mubr.bf16.gmra.mrb[20].mxu1 %v1870_v40 }
  0xa4   : > { %837 = vmatprep.mubr.bf16.mxu0 %v1832_v41  ;;  %965 = vmatprep.mubr.bf16.mxu1 %v1874_v42 }
  0xab   : > { %838 = vmatmul.mubr.bf16.gmra.mrb[24].mxu0 %v1834_v43  ;;  %966 = vmatmul.mubr.bf16.gmra.mrb[24].mxu1 %v1876_v44 }
  0xac   : > { %845 = vmatprep.mubr.bf16.mxu0 %v1835_v45  ;;  %973 = vmatprep.mubr.bf16.mxu1 %v1880_v46 }
  0xb3   : > { %846 = vmatmul.mubr.bf16.gmra.mrb[28].mxu0 %v1837_v47  ;;  %974 = vmatmul.mubr.bf16.gmra.mrb[28].mxu1 %v1882_v48 }
  0xb4   : > { %853 = vmatprep.mubr.bf16.mxu0 %v1841_v49  ;;  %981 = vmatprep.mubr.bf16.mxu1 %v1886_v50 }
  0xbb   : > { %854 = vmatmul.mubr.bf16.gmra.mrb[32].mxu0 %v1843_v51  ;;  %982 = vmatmul.mubr.bf16.gmra.mrb[32].mxu1 %v1888_v52 }
  0xbc   : > { %861 = vmatprep.mubr.bf16.mxu0 %v1847_v53  ;;  %989 = vmatprep.mubr.bf16.mxu1 %v1889_v54 }
  0xc3   : > { %862 = vmatmul.mubr.bf16.gmra.mrb[36].mxu0 %v1849_v55  ;;  %990 = vmatmul.mubr.bf16.gmra.mrb[36].mxu1 %v1891_v56 }
  0xc4   : > { %869 = vmatprep.mubr.bf16.mxu0 %v1853_v57  ;;  %997 = vmatprep.mubr.bf16.mxu1 %v1892_v58 }
  0xcb   : > { %870 = vmatmul.mubr.bf16.gmra.mrb[40].mxu0 %v1855_v59  ;;  %998 = vmatmul.mubr.bf16.gmra.mrb[40].mxu1 %v1894_v60 }
  0xcc   : > { %877 = vmatprep.mubr.bf16.mxu0 %v1859_v61  ;;  %1005 = vmatprep.mubr.bf16.mxu1 %v1895_v62 }
  0xd3   : > { %878 = vmatmul.mubr.bf16.gmra.mrb[44].mxu0 %v1861_v63  ;;  %1006 = vmatmul.mubr.bf16.gmra.mrb[44].mxu1 %v1897_v0 }
  0xd4   : > { %885 = vmatprep.mubr.bf16.mxu0 %v1865_v1  ;;  %1013 = vmatprep.mubr.bf16.mxu1 %v1898_v2 }
  0xdb   : > { %886 = vmatmul.mubr.bf16.gmra.mrb[48].mxu0 %v1867_v3  ;;  %1014 = vmatmul.mubr.bf16.gmra.mrb[48].mxu1 %v1900_v4 }
  0xdc   : > { %893 = vmatprep.mubr.bf16.mxu0 %v1871_v5  ;;  %1021 = vmatprep.mubr.bf16.mxu1 %v1901_v6 }
  0xe3   : > { %894 = vmatmul.mubr.bf16.gmra.mrb[52].mxu0 %v1873_v7  ;;  %1022 = vmatmul.mubr.bf16.gmra.mrb[52].mxu1 %v1903_v8 }
  0xe4   : > { %901 = vmatprep.mubr.bf16.mxu0 %v1877_v9  ;;  %1029 = vmatprep.mubr.bf16.mxu1 %v1904_v10 }
  0xeb   : > { %902 = vmatmul.mubr.bf16.gmra.mrb[56].mxu0 %v1879_v11  ;;  %1030 = vmatmul.mubr.bf16.gmra.mrb[56].mxu1 %v1906_v12 }
  0xec   : > { %909 = vmatprep.mubr.bf16.mxu0 %v1883_v13  ;;  %1037 = vmatprep.mubr.bf16.mxu1 %v1907_v14 }
  0xf3   : > { %910 = vmatmul.mubr.bf16.gmra.mrb[60].mxu0 %v1885_v15  ;;  %1038 = vmatmul.mubr.bf16.gmra.mrb[60].mxu1 %v1909_v16 }
 0x14e   : > { %v791_v17 = vpop.f32.mrb[0].mxu0  ;;  %v2320_v18 = vpop.f32.mrb[0].mxu1 }
 0x14f   : > { %1047 = vst.msk [vmem:[%s2318_s23] sm:$0xff] %vm1046_vm0, %v791_v17  ;;  %v1244_v19 = vmul.f32 %v791_v17, %v791_v17  ;;  %v793_v20 = vpop.f32.mrb[1].mxu0  ;;  %1079 = vst.msk [vmem:[%s2318_s23 + $0x100] sm:$0xff] %vm1046_vm0, %v2320_v18  ;;  %v921_v21 = vpop.f32.mrb[1].mxu1  ;;  %v1111_v24 = vsel %vm1046_vm0, %v791_v17, 0.0 }
 0x150   : > { %v794_v22 = vpop.f32.mrb[2].mxu0  ;;  %v2327_v23 = vpop.f32.mrb[2].mxu1 }
 0x151   : > { %1048 = vst.msk [vmem:[%s2318_s23 + $0x8] sm:$0xff] %vm1046_vm0, %v794_v22  ;;  %v1112_v25 = vsel %vm1046_vm0, %v794_v22, 0.0  ;;  %v1245_v26 = vmul.f32 %v794_v22, %v794_v22  ;;  %v796_v27 = vpop.f32.mrb[3].mxu0  ;;  %1080 = vst.msk [vmem:[%s2318_s23 + $0x108] sm:$0xff] %vm1046_vm0, %v2327_v23  ;;  %v924_v28 = vpop.f32.mrb[3].mxu1  ;;  %v1308_v30 = vsel %vm1046_vm0, %v1244_v19, 0.0 }
 0x152   : > { %v1113_v29 = vadd.f32 %v1112_v25, %v1111_v24 }
 0x153   : > { %v1309_v31 = vsel %vm1046_vm0, %v1245_v26, 0.0 }
 0x154   : > { %v1310_v32 = vadd.f32 %v1309_v31, %v1308_v30 }
 0x156   : > { %v799_v33 = vpop.f32.mrb[4].mxu0  ;;  %v2338_v34 = vpop.f32.mrb[4].mxu1 }
 0x157   : > { %1049 = vst.msk [vmem:[%s2318_s23 + $0x10] sm:$0xff] %vm1046_vm0, %v799_v33  ;;  %v1114_v35 = vsel %vm1046_vm0, %v799_v33, 0.0  ;;  %v1246_v36 = vmul.f32 %v799_v33, %v799_v33  ;;  %v801_v37 = vpop.f32.mrb[5].mxu0  ;;  %1081 = vst.msk [vmem:[%s2318_s23 + $0x110] sm:$0xff] %vm1046_vm0, %v2338_v34  ;;  %v929_v38 = vpop.f32.mrb[5].mxu1 }
 0x158   : > { %v1115_v39 = vadd.f32 %v1114_v35, %v1113_v29  ;;  %v802_v40 = vpop.f32.mrb[6].mxu0  ;;  %v2346_v41 = vpop.f32.mrb[6].mxu1 }
 0x159   : > { %v1311_v42 = vsel %vm1046_vm0, %v1246_v36, 0.0  ;;  %1050 = vst.msk [vmem:[%s2318_s23 + $0x18] sm:$0xff] %vm1046_vm0, %v802_v40  ;;  %v1116_v43 = vsel %vm1046_vm0, %v802_v40, 0.0  ;;  %v1247_v44 = vmul.f32 %v802_v40, %v802_v40  ;;  %v804_v45 = vpop.f32.mrb[7].mxu0  ;;  %1082 = vst.msk [vmem:[%s2318_s23 + $0x118] sm:$0xff] %vm1046_vm0, %v2346_v41  ;;  %v932_v46 = vpop.f32.mrb[7].mxu1 }
 0x15a   : > { %v1312_v47 = vadd.f32 %v1311_v42, %v1310_v32  ;;  %v1117_v48 = vadd.f32 %v1116_v43, %v1115_v39 }
 0x15b   : > { %v1313_v49 = vsel %vm1046_vm0, %v1247_v44, 0.0 }
 0x15c   : > { %v1314_v50 = vadd.f32 %v1313_v49, %v1312_v47 }
 0x15e   : > { %v807_v51 = vpop.f32.mrb[8].mxu0  ;;  %v2356_v52 = vpop.f32.mrb[8].mxu1 }
 0x15f   : > { %1051 = vst.msk [vmem:[%s2318_s23 + $0x20] sm:$0xff] %vm1046_vm0, %v807_v51  ;;  %v1118_v53 = vsel %vm1046_vm0, %v807_v51, 0.0  ;;  %v1248_v54 = vmul.f32 %v807_v51, %v807_v51  ;;  %v809_v55 = vpop.f32.mrb[9].mxu0  ;;  %1083 = vst.msk [vmem:[%s2318_s23 + $0x120] sm:$0xff] %vm1046_vm0, %v2356_v52  ;;  %v937_v56 = vpop.f32.mrb[9].mxu1 }
 0x160   : > { %v1119_v57 = vadd.f32 %v1118_v53, %v1117_v48  ;;  %v810_v58 = vpop.f32.mrb[10].mxu0  ;;  %v2364_v59 = vpop.f32.mrb[10].mxu1 }
 0x161   : > { %v1315_v60 = vsel %vm1046_vm0, %v1248_v54, 0.0  ;;  %1052 = vst.msk [vmem:[%s2318_s23 + $0x28] sm:$0xff] %vm1046_vm0, %v810_v58  ;;  %v1120_v61 = vsel %vm1046_vm0, %v810_v58, 0.0  ;;  %v1249_v62 = vmul.f32 %v810_v58, %v810_v58  ;;  %v812_v63 = vpop.f32.mrb[11].mxu0  ;;  %1084 = vst.msk [vmem:[%s2318_s23 + $0x128] sm:$0xff] %vm1046_vm0, %v2364_v59  ;;  %v940_v0 = vpop.f32.mrb[11].mxu1 }
 0x162   : > { %v1316_v1 = vadd.f32 %v1315_v60, %v1314_v50  ;;  %v1121_v2 = vadd.f32 %v1120_v61, %v1119_v57 }
 0x163   : > { %v1317_v3 = vsel %vm1046_vm0, %v1249_v62, 0.0 }
 0x164   : > { %v1318_v4 = vadd.f32 %v1317_v3, %v1316_v1 }
 0x166   : > { %v815_v5 = vpop.f32.mrb[12].mxu0  ;;  %v2374_v6 = vpop.f32.mrb[12].mxu1 }
 0x167   : > { %1053 = vst.msk [vmem:[%s2318_s23 + $0x30] sm:$0xff] %vm1046_vm0, %v815_v5  ;;  %v1122_v7 = vsel %vm1046_vm0, %v815_v5, 0.0  ;;  %v1250_v8 = vmul.f32 %v815_v5, %v815_v5  ;;  %v817_v9 = vpop.f32.mrb[13].mxu0  ;;  %1085 = vst.msk [vmem:[%s2318_s23 + $0x130] sm:$0xff] %vm1046_vm0, %v2374_v6  ;;  %v945_v10 = vpop.f32.mrb[13].mxu1 }
 0x168   : > { %v1123_v11 = vadd.f32 %v1122_v7, %v1121_v2  ;;  %v818_v12 = vpop.f32.mrb[14].mxu0  ;;  %v2382_v13 = vpop.f32.mrb[14].mxu1 }
 0x169   : > { %v1319_v14 = vsel %vm1046_vm0, %v1250_v8, 0.0  ;;  %1054 = vst.msk [vmem:[%s2318_s23 + $0x38] sm:$0xff] %vm1046_vm0, %v818_v12  ;;  %v1124_v15 = vsel %vm1046_vm0, %v818_v12, 0.0  ;;  %v1251_v16 = vmul.f32 %v818_v12, %v818_v12  ;;  %v820_v17 = vpop.f32.mrb[15].mxu0  ;;  %1086 = vst.msk [vmem:[%s2318_s23 + $0x138] sm:$0xff] %vm1046_vm0, %v2382_v13  ;;  %v948_v19 = vpop.f32.mrb[15].mxu1 }
 0x16a   : > { %v1320_v20 = vadd.f32 %v1319_v14, %v1318_v4  ;;  %v1125_v21 = vadd.f32 %v1124_v15, %v1123_v11 }
 0x16b   : > { %v1321_v22 = vsel %vm1046_vm0, %v1251_v16, 0.0 }
 0x16c   : > { %v1322_v24 = vadd.f32 %v1321_v22, %v1320_v20 }
 0x16e   : > { %v823_v25 = vpop.f32.mrb[16].mxu0  ;;  %v2392_v26 = vpop.f32.mrb[16].mxu1 }
 0x16f   : > { %1055 = vst.msk [vmem:[%s2318_s23 + $0x40] sm:$0xff] %vm1046_vm0, %v823_v25  ;;  %v1126_v27 = vsel %vm1046_vm0, %v823_v25, 0.0  ;;  %v1252_v28 = vmul.f32 %v823_v25, %v823_v25  ;;  %v825_v29 = vpop.f32.mrb[17].mxu0  ;;  %1087 = vst.msk [vmem:[%s2318_s23 + $0x140] sm:$0xff] %vm1046_vm0, %v2392_v26  ;;  %v953_v30 = vpop.f32.mrb[17].mxu1 }
 0x170   : > { %v1127_v31 = vadd.f32 %v1126_v27, %v1125_v21  ;;  %v826_v32 = vpop.f32.mrb[18].mxu0  ;;  %v2400_v33 = vpop.f32.mrb[18].mxu1 }
 0x171   : > { %v1323_v35 = vsel %vm1046_vm0, %v1252_v28, 0.0  ;;  %1056 = vst.msk [vmem:[%s2318_s23 + $0x48] sm:$0xff] %vm1046_vm0, %v826_v32  ;;  %v1128_v36 = vsel %vm1046_vm0, %v826_v32, 0.0  ;;  %v1253_v37 = vmul.f32 %v826_v32, %v826_v32  ;;  %v828_v38 = vpop.f32.mrb[19].mxu0  ;;  %1088 = vst.msk [vmem:[%s2318_s23 + $0x148] sm:$0xff] %vm1046_vm0, %v2400_v33  ;;  %v956_v39 = vpop.f32.mrb[19].mxu1 }
 0x172   : > { %v1324_v40 = vadd.f32 %v1323_v35, %v1322_v24  ;;  %v1129_v42 = vadd.f32 %v1128_v36, %v1127_v31 }
 0x173   : > { %v1325_v43 = vsel %vm1046_vm0, %v1253_v37, 0.0 }
 0x174   : > { %v1326_v44 = vadd.f32 %v1325_v43, %v1324_v40 }
 0x176   : > { %v831_v45 = vpop.f32.mrb[20].mxu0  ;;  %v2410_v46 = vpop.f32.mrb[20].mxu1 }
 0x177   : > { %1057 = vst.msk [vmem:[%s2318_s23 + $0x50] sm:$0xff] %vm1046_vm0, %v831_v45  ;;  %v1130_v47 = vsel %vm1046_vm0, %v831_v45, 0.0  ;;  %v1254_v48 = vmul.f32 %v831_v45, %v831_v45  ;;  %v833_v49 = vpop.f32.mrb[21].mxu0  ;;  %1089 = vst.msk [vmem:[%s2318_s23 + $0x150] sm:$0xff] %vm1046_vm0, %v2410_v46  ;;  %v961_v50 = vpop.f32.mrb[21].mxu1 }
 0x178   : > { %v1131_v51 = vadd.f32 %v1130_v47, %v1129_v42  ;;  %v834_v53 = vpop.f32.mrb[22].mxu0  ;;  %v2418_v54 = vpop.f32.mrb[22].mxu1 }
 0x179   : > { %v1327_v55 = vsel %vm1046_vm0, %v1254_v48, 0.0  ;;  %1058 = vst.msk [vmem:[%s2318_s23 + $0x58] sm:$0xff] %vm1046_vm0, %v834_v53  ;;  %v1132_v56 = vsel %vm1046_vm0, %v834_v53, 0.0  ;;  %v1255_v57 = vmul.f32 %v834_v53, %v834_v53  ;;  %v836_v58 = vpop.f32.mrb[23].mxu0  ;;  %1090 = vst.msk [vmem:[%s2318_s23 + $0x158] sm:$0xff] %vm1046_vm0, %v2418_v54  ;;  %v964_v60 = vpop.f32.mrb[23].mxu1 }
 0x17a   : > { %v1328_v61 = vadd.f32 %v1327_v55, %v1326_v44  ;;  %v1133_v62 = vadd.f32 %v1132_v56, %v1131_v51 }
 0x17b   : > { %v1329_v63 = vsel %vm1046_vm0, %v1255_v57, 0.0 }
 0x17c   : > { %v1330_v0 = vadd.f32 %v1329_v63, %v1328_v61 }
 0x17e   : > { %v839_v1 = vpop.f32.mrb[24].mxu0  ;;  %v2428_v2 = vpop.f32.mrb[24].mxu1 }
 0x17f   : > { %1059 = vst.msk [vmem:[%s2318_s23 + $0x60] sm:$0xff] %vm1046_vm0, %v839_v1  ;;  %v1134_v3 = vsel %vm1046_vm0, %v839_v1, 0.0  ;;  %v1256_v4 = vmul.f32 %v839_v1, %v839_v1  ;;  %v841_v5 = vpop.f32.mrb[25].mxu0  ;;  %1091 = vst.msk [vmem:[%s2318_s23 + $0x160] sm:$0xff] %vm1046_vm0, %v2428_v2  ;;  %v969_v7 = vpop.f32.mrb[25].mxu1 }
 0x180   : > { %v1135_v8 = vadd.f32 %v1134_v3, %v1133_v62  ;;  %v842_v9 = vpop.f32.mrb[26].mxu0  ;;  %v2436_v10 = vpop.f32.mrb[26].mxu1 }
 0x181   : > { %v1331_v11 = vsel %vm1046_vm0, %v1256_v4, 0.0  ;;  %1060 = vst.msk [vmem:[%s2318_s23 + $0x68] sm:$0xff] %vm1046_vm0, %v842_v9  ;;  %v1136_v12 = vsel %vm1046_vm0, %v842_v9, 0.0  ;;  %v1257_v14 = vmul.f32 %v842_v9, %v842_v9  ;;  %v844_v15 = vpop.f32.mrb[27].mxu0  ;;  %1092 = vst.msk [vmem:[%s2318_s23 + $0x168] sm:$0xff] %vm1046_vm0, %v2436_v10  ;;  %v972_v16 = vpop.f32.mrb[27].mxu1 }
 0x182   : > { %v1332_v17 = vadd.f32 %v1331_v11, %v1330_v0  ;;  %v1137_v19 = vadd.f32 %v1136_v12, %v1135_v8 }
 0x183   : > { %v1333_v20 = vsel %vm1046_vm0, %v1257_v14, 0.0 }
 0x184   : > { %v1334_v21 = vadd.f32 %v1333_v20, %v1332_v17 }
 0x186   : > { %v847_v22 = vpop.f32.mrb[28].mxu0  ;;  %v2446_v24 = vpop.f32.mrb[28].mxu1 }
 0x187   : > { %1061 = vst.msk [vmem:[%s2318_s23 + $0x70] sm:$0xff] %vm1046_vm0, %v847_v22  ;;  %v1138_v25 = vsel %vm1046_vm0, %v847_v22, 0.0  ;;  %v1258_v27 = vmul.f32 %v847_v22, %v847_v22  ;;  %v849_v28 = vpop.f32.mrb[29].mxu0  ;;  %1093 = vst.msk [vmem:[%s2318_s23 + $0x170] sm:$0xff] %vm1046_vm0, %v2446_v24  ;;  %v977_v29 = vpop.f32.mrb[29].mxu1 }
 0x188   : > { %v1139_v30 = vadd.f32 %v1138_v25, %v1137_v19  ;;  %v850_v31 = vpop.f32.mrb[30].mxu0  ;;  %v2454_v32 = vpop.f32.mrb[30].mxu1 }
 0x189   : > { %v1335_v35 = vsel %vm1046_vm0, %v1258_v27, 0.0  ;;  %1062 = vst.msk [vmem:[%s2318_s23 + $0x78] sm:$0xff] %vm1046_vm0, %v850_v31  ;;  %v1140_v36 = vsel %vm1046_vm0, %v850_v31, 0.0  ;;  %v1259_v37 = vmul.f32 %v850_v31, %v850_v31  ;;  %v852_v38 = vpop.f32.mrb[31].mxu0  ;;  %1094 = vst.msk [vmem:[%s2318_s23 + $0x178] sm:$0xff] %vm1046_vm0, %v2454_v32  ;;  %v980_v39 = vpop.f32.mrb[31].mxu1 }
 0x18a   : > { %v1336_v40 = vadd.f32 %v1335_v35, %v1334_v21  ;;  %v1141_v42 = vadd.f32 %v1140_v36, %v1139_v30 }
 0x18b   : > { %v1337_v43 = vsel %vm1046_vm0, %v1259_v37, 0.0 }
 0x18c   : > { %v1338_v44 = vadd.f32 %v1337_v43, %v1336_v40 }
 0x18e   : > { %v855_v45 = vpop.f32.mrb[32].mxu0  ;;  %v2464_v47 = vpop.f32.mrb[32].mxu1 }
 0x18f   : > { %1063 = vst.msk [vmem:[%s2318_s23 + $0x80] sm:$0xff] %vm1046_vm0, %v855_v45  ;;  %v1142_v48 = vsel %vm1046_vm0, %v855_v45, 0.0  ;;  %v1260_v49 = vmul.f32 %v855_v45, %v855_v45  ;;  %v857_v50 = vpop.f32.mrb[33].mxu0  ;;  %1095 = vst.msk [vmem:[%s2318_s23 + $0x180] sm:$0xff] %vm1046_vm0, %v2464_v47  ;;  %v985_v51 = vpop.f32.mrb[33].mxu1 }
 0x190   : > { %v1143_v53 = vadd.f32 %v1142_v48, %v1141_v42  ;;  %v858_v55 = vpop.f32.mrb[34].mxu0  ;;  %v2472_v56 = vpop.f32.mrb[34].mxu1 }
 0x191   : > { %v1339_v57 = vsel %vm1046_vm0, %v1260_v49, 0.0  ;;  %1064 = vst.msk [vmem:[%s2318_s23 + $0x88] sm:$0xff] %vm1046_vm0, %v858_v55  ;;  %v1144_v58 = vsel %vm1046_vm0, %v858_v55, 0.0  ;;  %v1261_v60 = vmul.f32 %v858_v55, %v858_v55  ;;  %v860_v61 = vpop.f32.mrb[35].mxu0  ;;  %1096 = vst.msk [vmem:[%s2318_s23 + $0x188] sm:$0xff] %vm1046_vm0, %v2472_v56  ;;  %v988_v62 = vpop.f32.mrb[35].mxu1 }
 0x192   : > { %v1340_v63 = vadd.f32 %v1339_v57, %v1338_v44  ;;  %v1145_v0 = vadd.f32 %v1144_v58, %v1143_v53 }
 0x193   : > { %v1341_v1 = vsel %vm1046_vm0, %v1261_v60, 0.0 }
 0x194   : > { %v1342_v3 = vadd.f32 %v1341_v1, %v1340_v63 }
 0x196   : > { %v863_v4 = vpop.f32.mrb[36].mxu0  ;;  %v2482_v5 = vpop.f32.mrb[36].mxu1 }
 0x197   : > { %1065 = vst.msk [vmem:[%s2318_s23 + $0x90] sm:$0xff] %vm1046_vm0, %v863_v4  ;;  %v1146_v7 = vsel %vm1046_vm0, %v863_v4, 0.0  ;;  %v1262_v8 = vmul.f32 %v863_v4, %v863_v4  ;;  %v865_v9 = vpop.f32.mrb[37].mxu0  ;;  %1097 = vst.msk [vmem:[%s2318_s23 + $0x190] sm:$0xff] %vm1046_vm0, %v2482_v5  ;;  %v993_v11 = vpop.f32.mrb[37].mxu1 }
 0x198   : > { %v1147_v12 = vadd.f32 %v1146_v7, %v1145_v0  ;;  %v866_v14 = vpop.f32.mrb[38].mxu0  ;;  %v2490_v15 = vpop.f32.mrb[38].mxu1 }
 0x199   : > { %v1343_v16 = vsel %vm1046_vm0, %v1262_v8, 0.0  ;;  %1066 = vst.msk [vmem:[%s2318_s23 + $0x98] sm:$0xff] %vm1046_vm0, %v866_v14  ;;  %v1148_v17 = vsel %vm1046_vm0, %v866_v14, 0.0  ;;  %v1263_v19 = vmul.f32 %v866_v14, %v866_v14  ;;  %v868_v20 = vpop.f32.mrb[39].mxu0  ;;  %1098 = vst.msk [vmem:[%s2318_s23 + $0x198] sm:$0xff] %vm1046_vm0, %v2490_v15  ;;  %v996_v21 = vpop.f32.mrb[39].mxu1 }
 0x19a   : > { %v1344_v22 = vadd.f32 %v1343_v16, %v1342_v3  ;;  %v1149_v25 = vadd.f32 %v1148_v17, %v1147_v12 }
 0x19b   : > { %v1345_v27 = vsel %vm1046_vm0, %v1263_v19, 0.0 }
 0x19c   : > { %v1346_v28 = vadd.f32 %v1345_v27, %v1344_v22 }
 0x19e   : > { %v871_v29 = vpop.f32.mrb[40].mxu0  ;;  %v2500_v30 = vpop.f32.mrb[40].mxu1 }
 0x19f   : > { %1067 = vst.msk [vmem:[%s2318_s23 + $0xa0] sm:$0xff] %vm1046_vm0, %v871_v29  ;;  %v1150_v31 = vsel %vm1046_vm0, %v871_v29, 0.0  ;;  %v1264_v35 = vmul.f32 %v871_v29, %v871_v29  ;;  %v873_v36 = vpop.f32.mrb[41].mxu0  ;;  %1099 = vst.msk [vmem:[%s2318_s23 + $0x1a0] sm:$0xff] %vm1046_vm0, %v2500_v30  ;;  %v1001_v37 = vpop.f32.mrb[41].mxu1 }
 0x1a0   : > { %v1151_v38 = vadd.f32 %v1150_v31, %v1149_v25  ;;  %v874_v39 = vpop.f32.mrb[42].mxu0  ;;  %v2508_v40 = vpop.f32.mrb[42].mxu1 }
 0x1a1   : > { %v1347_v42 = vsel %vm1046_vm0, %v1264_v35, 0.0  ;;  %1068 = vst.msk [vmem:[%s2318_s23 + $0xa8] sm:$0xff] %vm1046_vm0, %v874_v39  ;;  %v1152_v43 = vsel %vm1046_vm0, %v874_v39, 0.0  ;;  %v1265_v44 = vmul.f32 %v874_v39, %v874_v39  ;;  %v876_v45 = vpop.f32.mrb[43].mxu0  ;;  %1100 = vst.msk [vmem:[%s2318_s23 + $0x1a8] sm:$0xff] %vm1046_vm0, %v2508_v40  ;;  %v1004_v48 = vpop.f32.mrb[43].mxu1 }
 0x1a2   : > { %v1348_v49 = vadd.f32 %v1347_v42, %v1346_v28  ;;  %v1153_v50 = vadd.f32 %v1152_v43, %v1151_v38 }
 0x1a3   : > { %v1349_v51 = vsel %vm1046_vm0, %v1265_v44, 0.0 }
 0x1a4   : > { %v1350_v53 = vadd.f32 %v1349_v51, %v1348_v49 }
 0x1a6   : > { %v879_v55 = vpop.f32.mrb[44].mxu0  ;;  %v2518_v57 = vpop.f32.mrb[44].mxu1 }
 0x1a7   : > { %1069 = vst.msk [vmem:[%s2318_s23 + $0xb0] sm:$0xff] %vm1046_vm0, %v879_v55  ;;  %v1154_v58 = vsel %vm1046_vm0, %v879_v55, 0.0  ;;  %v1266_v60 = vmul.f32 %v879_v55, %v879_v55  ;;  %v881_v61 = vpop.f32.mrb[45].mxu0  ;;  %1101 = vst.msk [vmem:[%s2318_s23 + $0x1b0] sm:$0xff] %vm1046_vm0, %v2518_v57  ;;  %v1009_v62 = vpop.f32.mrb[45].mxu1 }
 0x1a8   : > { %v1155_v63 = vadd.f32 %v1154_v58, %v1153_v50  ;;  %v882_v0 = vpop.f32.mrb[46].mxu0  ;;  %v2526_v1 = vpop.f32.mrb[46].mxu1 }
 0x1a9   : > { %v1351_v3 = vsel %vm1046_vm0, %v1266_v60, 0.0  ;;  %1070 = vst.msk [vmem:[%s2318_s23 + $0xb8] sm:$0xff] %vm1046_vm0, %v882_v0  ;;  %v1156_v4 = vsel %vm1046_vm0, %v882_v0, 0.0  ;;  %v1267_v7 = vmul.f32 %v882_v0, %v882_v0  ;;  %v884_v8 = vpop.f32.mrb[47].mxu0  ;;  %1102 = vst.msk [vmem:[%s2318_s23 + $0x1b8] sm:$0xff] %vm1046_vm0, %v2526_v1  ;;  %v1012_v9 = vpop.f32.mrb[47].mxu1 }
 0x1aa   : > { %v1352_v11 = vadd.f32 %v1351_v3, %v1350_v53  ;;  %v1157_v12 = vadd.f32 %v1156_v4, %v1155_v63 }
 0x1ab   : > { %v1353_v14 = vsel %vm1046_vm0, %v1267_v7, 0.0 }
 0x1ac   : > { %v1354_v16 = vadd.f32 %v1353_v14, %v1352_v11 }
 0x1ae   : > { %v887_v17 = vpop.f32.mrb[48].mxu0  ;;  %v2536_v19 = vpop.f32.mrb[48].mxu1 }
 0x1af   : > { %1071 = vst.msk [vmem:[%s2318_s23 + $0xc0] sm:$0xff] %vm1046_vm0, %v887_v17  ;;  %v1158_v20 = vsel %vm1046_vm0, %v887_v17, 0.0  ;;  %v1268_v21 = vmul.f32 %v887_v17, %v887_v17  ;;  %v889_v22 = vpop.f32.mrb[49].mxu0  ;;  %1103 = vst.msk [vmem:[%s2318_s23 + $0x1c0] sm:$0xff] %vm1046_vm0, %v2536_v19  ;;  %v1017_v25 = vpop.f32.mrb[49].mxu1 }
 0x1b0   : > { %v1159_v27 = vadd.f32 %v1158_v20, %v1157_v12  ;;  %v890_v28 = vpop.f32.mrb[50].mxu0  ;;  %v2544_v29 = vpop.f32.mrb[50].mxu1 }
 0x1b1   : > { %v1355_v31 = vsel %vm1046_vm0, %v1268_v21, 0.0  ;;  %1072 = vst.msk [vmem:[%s2318_s23 + $0xc8] sm:$0xff] %vm1046_vm0, %v890_v28  ;;  %v1160_v35 = vsel %vm1046_vm0, %v890_v28, 0.0  ;;  %v1269_v36 = vmul.f32 %v890_v28, %v890_v28  ;;  %v892_v37 = vpop.f32.mrb[51].mxu0  ;;  %1104 = vst.msk [vmem:[%s2318_s23 + $0x1c8] sm:$0xff] %vm1046_vm0, %v2544_v29  ;;  %v1020_v38 = vpop.f32.mrb[51].mxu1 }
 0x1b2   : > { %v1356_v39 = vadd.f32 %v1355_v31, %v1354_v16  ;;  %v1161_v42 = vadd.f32 %v1160_v35, %v1159_v27 }
 0x1b3   : > { %v1357_v43 = vsel %vm1046_vm0, %v1269_v36, 0.0 }
 0x1b4   : > { %v1358_v44 = vadd.f32 %v1357_v43, %v1356_v39 }
 0x1b6   : > { %v895_v45 = vpop.f32.mrb[52].mxu0  ;;  %v2554_v48 = vpop.f32.mrb[52].mxu1 }
 0x1b7   : > { %1073 = vst.msk [vmem:[%s2318_s23 + $0xd0] sm:$0xff] %vm1046_vm0, %v895_v45  ;;  %v1162_v49 = vsel %vm1046_vm0, %v895_v45, 0.0  ;;  %v1270_v50 = vmul.f32 %v895_v45, %v895_v45  ;;  %v897_v51 = vpop.f32.mrb[53].mxu0  ;;  %1105 = vst.msk [vmem:[%s2318_s23 + $0x1d0] sm:$0xff] %vm1046_vm0, %v2554_v48  ;;  %v1025_v53 = vpop.f32.mrb[53].mxu1 }
 0x1b8   : > { %v1163_v55 = vadd.f32 %v1162_v49, %v1161_v42  ;;  %v898_v58 = vpop.f32.mrb[54].mxu0  ;;  %v2562_v60 = vpop.f32.mrb[54].mxu1 }
 0x1b9   : > { %v1359_v61 = vsel %vm1046_vm0, %v1270_v50, 0.0  ;;  %1074 = vst.msk [vmem:[%s2318_s23 + $0xd8] sm:$0xff] %vm1046_vm0, %v898_v58  ;;  %v1164_v62 = vsel %vm1046_vm0, %v898_v58, 0.0  ;;  %v1271_v63 = vmul.f32 %v898_v58, %v898_v58  ;;  %v900_v0 = vpop.f32.mrb[55].mxu0  ;;  %1106 = vst.msk [vmem:[%s2318_s23 + $0x1d8] sm:$0xff] %vm1046_vm0, %v2562_v60  ;;  %v1028_v3 = vpop.f32.mrb[55].mxu1 }
 0x1ba   : > { %v1360_v4 = vadd.f32 %v1359_v61, %v1358_v44  ;;  %v1165_v7 = vadd.f32 %v1164_v62, %v1163_v55  ;;  %v1276_v61 = vmul.f32 %v2320_v18, %v2320_v18 }
 0x1bb   : > { %v1361_v8 = vsel %vm1046_vm0, %v1271_v63, 0.0 }
 0x1bc   : > { %v1362_v9 = vadd.f32 %v1361_v8, %v1360_v4 }
 0x1be   : > { %v903_v11 = vpop.f32.mrb[56].mxu0  ;;  %v2572_v12 = vpop.f32.mrb[56].mxu1 }
 0x1bf   : > { %1075 = vst.msk [vmem:[%s2318_s23 + $0xe0] sm:$0xff] %vm1046_vm0, %v903_v11  ;;  %v1166_v14 = vsel %vm1046_vm0, %v903_v11, 0.0  ;;  %v1272_v16 = vmul.f32 %v903_v11, %v903_v11  ;;  %v905_v17 = vpop.f32.mrb[57].mxu0  ;;  %1107 = vst.msk [vmem:[%s2318_s23 + $0x1e0] sm:$0xff] %vm1046_vm0, %v2572_v12  ;;  %v1033_v20 = vpop.f32.mrb[57].mxu1  ;;  %v1277_v11 = vmul.f32 %v2327_v23, %v2327_v23 }
 0x1c0   : > { %v1167_v21 = vadd.f32 %v1166_v14, %v1165_v7  ;;  %v906_v22 = vpop.f32.mrb[58].mxu0  ;;  %v2580_v25 = vpop.f32.mrb[58].mxu1  ;;  %v1371_v20 = vsel %vm1046_vm0, %v1276_v61, 0.0 }
 0x1c1   : > { %v1363_v27 = vsel %vm1046_vm0, %v1272_v16, 0.0  ;;  %1076 = vst.msk [vmem:[%s2318_s23 + $0xe8] sm:$0xff] %vm1046_vm0, %v906_v22  ;;  %v1168_v28 = vsel %vm1046_vm0, %v906_v22, 0.0  ;;  %v1273_v31 = vmul.f32 %v906_v22, %v906_v22  ;;  %v908_v35 = vpop.f32.mrb[59].mxu0  ;;  %1108 = vst.msk [vmem:[%s2318_s23 + $0x1e8] sm:$0xff] %vm1046_vm0, %v2580_v25  ;;  %v1036_v36 = vpop.f32.mrb[59].mxu1  ;;  %v1278_v22 = vmul.f32 %v2338_v34, %v2338_v34 }
 0x1c2   : > { %v1364_v37 = vadd.f32 %v1363_v27, %v1362_v9  ;;  %v1169_v38 = vadd.f32 %v1168_v28, %v1167_v21  ;;  %v1174_v9 = vsel %vm1046_vm0, %v2320_v18, 0.0  ;;  %v1176_v21 = vsel %vm1046_vm0, %v2327_v23, 0.0 }
 0x1c3   : > { %v1365_v39 = vsel %vm1046_vm0, %v1273_v31, 0.0  ;;  %v1373_v31 = vsel %vm1046_vm0, %v1277_v11, 0.0  ;;  %v1178_v18 = vsel %vm1046_vm0, %v2338_v34, 0.0  ;;  %v1279_v35 = vmul.f32 %v2346_v41, %v2346_v41 }
 0x1c4   : > { %v1366_v42 = vadd.f32 %v1365_v39, %v1364_v37  ;;  %v1180_v23 = vsel %vm1046_vm0, %v2346_v41, 0.0  ;;  %v1280_v39 = vmul.f32 %v2356_v52, %v2356_v52  ;;  %v1182_v34 = vsel %vm1046_vm0, %v2356_v52, 0.0 }
 0x1c5   : > { %v1184_v41 = vsel %vm1046_vm0, %v2364_v59, 0.0  ;;  %v1186_v52 = vsel %vm1046_vm0, %v2374_v6, 0.0 }
 0x1c6   : > { %v911_v43 = vpop.f32.mrb[60].mxu0  ;;  %v2590_v44 = vpop.f32.mrb[60].mxu1 }
 0x1c7   : > { %1077 = vst.msk [vmem:[%s2318_s23 + $0xf0] sm:$0xff] %vm1046_vm0, %v911_v43  ;;  %v1170_v45 = vsel %vm1046_vm0, %v911_v43, 0.0  ;;  %v1274_v49 = vmul.f32 %v911_v43, %v911_v43  ;;  %v913_v50 = vpop.f32.mrb[61].mxu0  ;;  %1109 = vst.msk [vmem:[%s2318_s23 + $0x1f0] sm:$0xff] %vm1046_vm0, %v2590_v44  ;;  %v1041_v51 = vpop.f32.mrb[61].mxu1 }
 0x1c8   : > { %v1171_v53 = vadd.f32 %v1170_v45, %v1169_v38  ;;  %v914_v55 = vpop.f32.mrb[62].mxu0  ;;  %v2598_v58 = vpop.f32.mrb[62].mxu1  ;;  %v1375_v38 = vsel %vm1046_vm0, %v1278_v22, 0.0  ;;  %v1377_v45 = vsel %vm1046_vm0, %v1279_v35, 0.0  ;;  %v1286_v22 = vmul.f32 %v2410_v46, %v2410_v46 }
 0x1c9   : > { %v1367_v62 = vsel %vm1046_vm0, %v1274_v49, 0.0  ;;  %1078 = vst.msk [vmem:[%s2318_s23 + $0xf8] sm:$0xff] %vm1046_vm0, %v914_v55  ;;  %v1172_v63 = vsel %vm1046_vm0, %v914_v55, 0.0  ;;  %v1275_v0 = vmul.f32 %v914_v55, %v914_v55  ;;  %v916_v3 = vpop.f32.mrb[63].mxu0  ;;  %1110 = vst.msk [vmem:[%s2318_s23 + $0x1f8] sm:$0xff] %vm1046_vm0, %v2598_v58  ;;  %v1044_v4 = vpop.f32.mrb[63].mxu1  ;;  %v1281_v49 = vmul.f32 %v2364_v59, %v2364_v59 }
 0x1ca   : > { %v1368_v7 = vadd.f32 %v1367_v62, %v1366_v42  ;;  %v1173_v8 = vadd.f32 %v1172_v63, %v1171_v53  ;;  %v1379_v53 = vsel %vm1046_vm0, %v1280_v39, 0.0  ;;  %v1282_v55 = vmul.f32 %v2374_v6, %v2374_v6 }
 0x1cb   : > { %v1369_v14 = vsel %vm1046_vm0, %v1275_v0, 0.0  ;;  %v1381_v63 = vsel %vm1046_vm0, %v1281_v49, 0.0  ;;  %v1283_v0 = vmul.f32 %v2382_v13, %v2382_v13  ;;  %v1188_v59 = vsel %vm1046_vm0, %v2382_v13, 0.0 }
 0x1cc   : > { %v1175_v16 = vadd.f32 %v1174_v9, %v1173_v8  ;;  %v1370_v17 = vadd.f32 %v1369_v14, %v1368_v7  ;;  %v1383_v7 = vsel %vm1046_vm0, %v1282_v55, 0.0  ;;  %v1284_v8 = vmul.f32 %v2392_v26, %v2392_v26 }
 0x1cd   : > { %v1385_v14 = vsel %vm1046_vm0, %v1283_v0, 0.0  ;;  %v1190_v6 = vsel %vm1046_vm0, %v2392_v26, 0.0  ;;  %v1192_v13 = vsel %vm1046_vm0, %v2400_v33, 0.0  ;;  %v1194_v26 = vsel %vm1046_vm0, %v2410_v46, 0.0 }
 0x1ce   : > { %v1177_v27 = vadd.f32 %v1176_v21, %v1175_v16  ;;  %v1372_v28 = vadd.f32 %v1371_v20, %v1370_v17  ;;  %v1285_v16 = vmul.f32 %v2400_v33, %v2400_v33  ;;  %v1387_v21 = vsel %vm1046_vm0, %v1284_v8, 0.0 }
 0x1cf   : > { %v1196_v33 = vsel %vm1046_vm0, %v2418_v54, 0.0  ;;  %v1198_v46 = vsel %vm1046_vm0, %v2428_v2, 0.0  ;;  %v1291_v55 = vmul.f32 %v2454_v32, %v2454_v32 }
 0x1d0   : > { %v1179_v36 = vadd.f32 %v1178_v18, %v1177_v27  ;;  %v1374_v37 = vadd.f32 %v1373_v31, %v1372_v28  ;;  %v1389_v31 = vsel %vm1046_vm0, %v1285_v16, 0.0  ;;  %v1287_v18 = vmul.f32 %v2418_v54, %v2418_v54 }
 0x1d1   : > { %v1200_v54 = vsel %vm1046_vm0, %v2436_v10, 0.0 }
 0x1d2   : > { %v1181_v42 = vadd.f32 %v1180_v23, %v1179_v36  ;;  %v1376_v43 = vadd.f32 %v1375_v38, %v1374_v37  ;;  %v1391_v37 = vsel %vm1046_vm0, %v1286_v22, 0.0  ;;  %v1288_v38 = vmul.f32 %v2428_v2, %v2428_v2 }
 0x1d3   : > { %v1202_v2 = vsel %vm1046_vm0, %v2446_v24, 0.0  ;;  %v1296_v22 = vmul.f32 %v2500_v30, %v2500_v30 }
 0x1d4   : > { %v1183_v50 = vadd.f32 %v1182_v34, %v1181_v42  ;;  %v1378_v51 = vadd.f32 %v1377_v45, %v1376_v43  ;;  %v1393_v42 = vsel %vm1046_vm0, %v1287_v18, 0.0  ;;  %v1289_v43 = vmul.f32 %v2436_v10, %v2436_v10 }
 0x1d5   : > { %v1395_v49 = vsel %vm1046_vm0, %v1288_v38, 0.0  ;;  %v1204_v10 = vsel %vm1046_vm0, %v2454_v32, 0.0  ;;  %v1208_v32 = vsel %vm1046_vm0, %v2472_v56, 0.0 }
 0x1d6   : > { %v1185_v61 = vadd.f32 %v1184_v41, %v1183_v50  ;;  %v1380_v62 = vadd.f32 %v1379_v53, %v1378_v51  ;;  %v1290_v50 = vmul.f32 %v2446_v24, %v2446_v24  ;;  %v1397_v41 = vsel %vm1046_vm0, %v1289_v43, 0.0 }
 0x1d7   : > { %v1206_v24 = vsel %vm1046_vm0, %v2464_v47, 0.0 }
 0x1d8   : > { %v1187_v3 = vadd.f32 %v1186_v52, %v1185_v61  ;;  %v1382_v4 = vadd.f32 %v1381_v63, %v1380_v62  ;;  %v1399_v63 = vsel %vm1046_vm0, %v1290_v50, 0.0  ;;  %v1292_v52 = vmul.f32 %v2464_v47, %v2464_v47 }
 0x1d9   : > { %v1210_v47 = vsel %vm1046_vm0, %v2482_v5, 0.0  ;;  %v1301_v50 = vmul.f32 %v2544_v29, %v2544_v29 }
 0x1da   : > { %v1189_v9 = vadd.f32 %v1188_v59, %v1187_v3  ;;  %v1384_v11 = vadd.f32 %v1383_v7, %v1382_v4  ;;  %v1401_v4 = vsel %vm1046_vm0, %v1291_v55, 0.0  ;;  %v1293_v7 = vmul.f32 %v2472_v56, %v2472_v56 }
 0x1db   : > { %v1212_v56 = vsel %vm1046_vm0, %v2490_v15, 0.0 }
 0x1dc   : > { %v1386_v17 = vadd.f32 %v1385_v14, %v1384_v11  ;;  %v1191_v20 = vadd.f32 %v1190_v6, %v1189_v9  ;;  %v1403_v9 = vsel %vm1046_vm0, %v1292_v52, 0.0  ;;  %v1294_v11 = vmul.f32 %v2482_v5, %v2482_v5 }
 0x1dd   : > { %v1405_v16 = vsel %vm1046_vm0, %v1293_v7, 0.0  ;;  %v1214_v5 = vsel %vm1046_vm0, %v2500_v30, 0.0  ;;  %v1218_v30 = vsel %vm1046_vm0, %v2518_v57, 0.0 }
 0x1de   : > { %v1193_v27 = vadd.f32 %v1192_v13, %v1191_v20  ;;  %v1388_v28 = vadd.f32 %v1387_v21, %v1386_v17  ;;  %v1295_v17 = vmul.f32 %v2490_v15, %v2490_v15  ;;  %v1407_v13 = vsel %vm1046_vm0, %v1294_v11, 0.0 }
 0x1df   : > { %v1216_v15 = vsel %vm1046_vm0, %v2508_v40, 0.0  ;;  %v1232_v11 = vsel %vm1046_vm0, %v2580_v25, 0.0 }
 0x1e0   : > { %v1195_v35 = vadd.f32 %v1194_v26, %v1193_v27  ;;  %v1390_v36 = vadd.f32 %v1389_v31, %v1388_v28  ;;  %v1409_v31 = vsel %vm1046_vm0, %v1295_v17, 0.0  ;;  %v1297_v26 = vmul.f32 %v2508_v40, %v2508_v40 }
 0x1e1   : > { %v1220_v40 = vsel %vm1046_vm0, %v2526_v1, 0.0  ;;  %v1307_v17 = vmul.f32 %v2598_v58, %v2598_v58 }
 0x1e2   : > { %v1197_v23 = vadd.f32 %v1196_v33, %v1195_v35  ;;  %v1392_v39 = vadd.f32 %v1391_v37, %v1390_v36  ;;  %v1411_v36 = vsel %vm1046_vm0, %v1296_v22, 0.0  ;;  %v1298_v37 = vmul.f32 %v2518_v57, %v2518_v57 }
 0x1e3   : > { %v1222_v57 = vsel %vm1046_vm0, %v2536_v19, 0.0  ;;  %v1433_v22 = vsel %vm1046_vm0, %v1307_v17, 0.0 }
 0x1e4   : > { %v1199_v45 = vadd.f32 %v1198_v46, %v1197_v23  ;;  %v1394_v34 = vadd.f32 %v1393_v42, %v1392_v39  ;;  %v1413_v23 = vsel %vm1046_vm0, %v1297_v26, 0.0  ;;  %v1299_v39 = vmul.f32 %v2526_v1, %v2526_v1 }
 0x1e5   : > { %v1415_v43 = vsel %vm1046_vm0, %v1298_v37, 0.0  ;;  %v1224_v1 = vsel %vm1046_vm0, %v2544_v29, 0.0  ;;  %v1228_v29 = vsel %vm1046_vm0, %v2562_v60, 0.0 }
 0x1e6   : > { %v1201_v51 = vadd.f32 %v1200_v54, %v1199_v45  ;;  %v1396_v53 = vadd.f32 %v1395_v49, %v1394_v34  ;;  %v1300_v45 = vmul.f32 %v2536_v19, %v2536_v19  ;;  %v1417_v54 = vsel %vm1046_vm0, %v1299_v39, 0.0 }
 0x1e7   : > { %v1226_v19 = vsel %vm1046_vm0, %v2554_v48, 0.0 }
 0x1e8   : > { %v1203_v61 = vadd.f32 %v1202_v2, %v1201_v51  ;;  %v1398_v62 = vadd.f32 %v1397_v41, %v1396_v53  ;;  %v1419_v41 = vsel %vm1046_vm0, %v1300_v45, 0.0  ;;  %v1302_v2 = vmul.f32 %v2554_v48, %v2554_v48 }
 0x1e9   : > { %v1230_v48 = vsel %vm1046_vm0, %v2572_v12, 0.0 }
 0x1ea   : > { %v1205_v0 = vadd.f32 %v1204_v10, %v1203_v61  ;;  %v1400_v3 = vadd.f32 %v1399_v63, %v1398_v62  ;;  %v1421_v62 = vsel %vm1046_vm0, %v1301_v50, 0.0  ;;  %v1303_v63 = vmul.f32 %v2562_v60, %v2562_v60 }
 0x1ec   : > { %v1207_v59 = vadd.f32 %v1206_v24, %v1205_v0  ;;  %v1402_v8 = vadd.f32 %v1401_v4, %v1400_v3  ;;  %v1423_v0 = vsel %vm1046_vm0, %v1302_v2, 0.0  ;;  %v1304_v3 = vmul.f32 %v2572_v12, %v2572_v12 }
 0x1ed   : > { %v1425_v7 = vsel %vm1046_vm0, %v1303_v63, 0.0 }
 0x1ee   : > { %v1404_v14 = vadd.f32 %v1403_v9, %v1402_v8  ;;  %v1209_v6 = vadd.f32 %v1208_v32, %v1207_v59  ;;  %v1305_v59 = vmul.f32 %v2580_v25, %v2580_v25  ;;  %v1306_v8 = vmul.f32 %v2590_v44, %v2590_v44 }
 0x1ef   : > { %v1427_v60 = vsel %vm1046_vm0, %v1304_v3, 0.0 }
 0x1f0   : > { %v1406_v20 = vadd.f32 %v1405_v16, %v1404_v14  ;;  %v1211_v21 = vadd.f32 %v1210_v47, %v1209_v6  ;;  %v1234_v14 = vsel %vm1046_vm0, %v2590_v44, 0.0  ;;  %v1429_v12 = vsel %vm1046_vm0, %v1305_v59, 0.0 }
 0x1f1   : > { %v1431_v47 = vsel %vm1046_vm0, %v1306_v8, 0.0 }
 0x1f2   : > { %v1408_v27 = vadd.f32 %v1407_v13, %v1406_v20  ;;  %v1213_v28 = vadd.f32 %v1212_v56, %v1211_v21  ;;  %v1236_v13 = vsel %vm1046_vm0, %v2598_v58, 0.0 }
 0x1f4   : > { %v1410_v18 = vadd.f32 %v1409_v31, %v1408_v27  ;;  %v1215_v35 = vadd.f32 %v1214_v5, %v1213_v28  ;;  %v1441_v5 = vlaneseq }
 0x1f6   : > { %v1412_v33 = vadd.f32 %v1411_v36, %v1410_v18  ;;  %v1217_v38 = vadd.f32 %v1216_v15, %v1215_v35  ;;  %v1442_v15 = vshrl.u32 %v1441_v5, 7 }
 0x1f8   : > { %v1414_v42 = vadd.f32 %v1413_v23, %v1412_v33  ;;  %v1219_v46 = vadd.f32 %v1218_v30, %v1217_v38  ;;  %vm1444_vm1 = vcmp.eq.s32.totalorder %v1442_v15, 1  ;;  %vm1443_vm2 = vcmp.eq.s32.totalorder %v1442_v15, 0 }
 0x1fa   : > { %v1416_v34 = vadd.f32 %v1415_v43, %v1414_v42  ;;  %v1221_v49 = vadd.f32 %v1220_v40, %v1219_v46 }
 0x1fc   : > { %v1418_v51 = vadd.f32 %v1417_v54, %v1416_v34  ;;  %v1223_v53 = vadd.f32 %v1222_v57, %v1221_v49 }
 0x1fe   : > { %v1420_v55 = vadd.f32 %v1419_v41, %v1418_v51  ;;  %v1225_v61 = vadd.f32 %v1224_v1, %v1223_v53 }
 0x200   : > { %v1422_v10 = vadd.f32 %v1421_v62, %v1420_v55  ;;  %v1227_v52 = vadd.f32 %v1226_v19, %v1225_v61 }
 0x202   : > { %v1424_v4 = vadd.f32 %v1423_v0, %v1422_v10  ;;  %v1229_v24 = vadd.f32 %v1228_v29, %v1227_v52 }
 0x204   : > { %v1426_v9 = vadd.f32 %v1425_v7, %v1424_v4  ;;  %v1231_v32 = vadd.f32 %v1230_v48, %v1229_v24 }
 0x206   : > { %v1428_v6 = vadd.f32 %v1427_v60, %v1426_v9  ;;  %v1233_v16 = vadd.f32 %v1232_v11, %v1231_v32 }
 0x208   : > { %v1430_v20 = vadd.f32 %v1429_v12, %v1428_v6  ;;  %v1235_v21 = vadd.f32 %v1234_v14, %v1233_v16 }
 0x20a   : > { %v1432_v56 = vadd.f32 %v1431_v47, %v1430_v20  ;;  %v1237_v25 = vadd.f32 %v1236_v13, %v1235_v21 }
 0x20c   : > { %v1238_v44 = vrot.slane %v1237_v25, 4  ;;  %v1434_v27 = vadd.f32 %v1433_v22, %v1432_v56 }
 0x20e   : > { %v1239_v28 = vadd.f32 %v1238_v44, %v1237_v25  ;;  %v1435_v31 = vrot.slane %v1434_v27, 4 }
 0x210   : > { %v1240_v26 = vrot.slane %v1239_v28, 2  ;;  %v1436_v18 = vadd.f32 %v1435_v31, %v1434_v27 }
 0x212   : > { %v1241_v35 = vadd.f32 %v1240_v26, %v1239_v28  ;;  %v1437_v36 = vrot.slane %v1436_v18, 2 }
 0x214   : > { %v1438_v37 = vadd.f32 %v1437_v36, %v1436_v18  ;;  %v1242_v33 = vrot.slane %v1241_v35, 1 }
 0x216   : > { %v1439_v58 = vrot.slane %v1438_v37, 1  ;;  %v1243_v23 = vadd.f32 %v1242_v33, %v1241_v35 }
 0x218   : > { %v1440_v38 = vadd.f32 %v1439_v58, %v1438_v37 }
 0x21a   : > { %v1445_v30 = vsel %vm1444_vm1, %v1440_v38, 0.0 }
 0x21b   : > { %v1446_v39 = vsel %vm1443_vm2, %v1243_v23, %v1445_v30 }
 0x21c   : > { %1447 = vst.msk [vmem:[%s229_s29] sm:$0xff] %vm1046_vm0, %v1446_v39 }
 0x21d   : > { %1953 = shalt.err (!%p1950_p4)
}
 0x21e   : > { %s1954_s11 = scalar_lea.hbm %s2773_s7, 128  ;;  %s1958_s24 = scalar_lea.hbm %s2825_s3, 512 }
 0x21f   : > { %p1955_p6 = scmp.ne.s32.totalorder %s2773_s7, %s1954_s11  ;;  %p1959_p2 = scmp.lt.u32.totalorder %s2773_s7, %s2825_s3 }
 0x220   : > { %p1960_p5 = scmp.lt.u32.totalorder %s1958_s24, %s1954_s11  ;;  %p1962_p9 = scmp.lt.u32.totalorder %s1954_s11, %s2773_s7 }
 0x221   : > { %p1956_p7 = pnand %p1955_p6, %p2833_p11 }
 0x222   : > { %p1961_p8 = por %p1960_p5, %p1959_p2 }
 0x223   : > { %p1957_p0 = pneg %p1956_p7 }
 0x224   : > { %p1963_p13 = por %p1962_p9, %p1961_p8 }
 0x226   : > { %p1964_p10 = pnand %p1963_p13, %p1957_p0 }
 0x228   : > { %1967 = shalt.err (!%p1964_p10)
}
 0x229   : > { %1735 = dma.vmem_to_hbm [thread:$0]  (%p2833_p11), %s2775_s30, 128, %s2773_s7, %s1457_s15  }
 0x22a PF: > { %p1746_p12 = scmp.ge.s32.totalorder %s2022_s17, 2  ;;  %s1498_s21 = sand.u32 1, %s2002_s12  }
 0x22b   : > { %p2834_p1 = scmp.ne.s32.totalorder %s2830_s27, 0  ;;  %s1499_s28 = scalar_lea.sflag [#allocation4], %s1498_s21 }
 0x22d   : > { %p1742_p3 = pnand %p1746_p12, %p2834_p1 }
 0x22f   : > { %1997 = dma.done.wait (!%p1742_p3), %s1499_s28, 128  }
 0x230   : > { %1999 = vsyncadd (!%p1742_p3), %s1499_s28, 4294967168  ;;  %s20_s17 = sadd.s32 1, %s2022_s17   ;;  %s2835_s12 = smov %s2006_s13 }
 0x231   : > { %p17_p4 = scmp.ge.s32.totalorder %s20_s17, 6   ;;  %s2836_s13 = smov %s2010_s14 }
 0x232   : > { %s2837_s14 = smov %s2105_s26  ;;  %s2838_s15 = smov %s2018_s16 }
 0x233   : > { %s2839_s16 = smov %s2841_s20  ;;  %19 = sbr.rel (!%p17_p4) target bundleno = 6 (0x6), region = 88 }
 0x23a   :  { %1504 = vsyncpa [#allocation3], 1 }
 0x23b   :  { %1506 = vsyncpa [#allocation3 + $0x1], 1 }
 0x23c   :  { %1507 = vsyncpa [#allocation4], 1 }
 0x23d   :  { %1509 = vsyncpa [#allocation4 + $0x1], 1 }

</bundles_post_ra>
